<compile_context>
chip_gen: v5e
topology: v5e:2x2
jax: 0.10.0
libtpu: 0.0.40
codegen_flags: <defaults>
</compile_context>

<pallas_src>
from functools import partial

import jax
import jax.numpy as jnp
from jax.experimental import pallas as pl
from jax.experimental.pallas import tpu as pltpu

EPS = 1e-5


def _bn_relu(a, gamma, beta, relu=True):
    """Single-pass training-mode BatchNorm over rows (= N*H*W), optional ReLU.

    a: (R, C) f32; gamma/beta: (1, C) f32.
    var = E[a^2] - mean^2, folded into a per-channel scale/bias -> one FMA.
    """
    inv_cnt = 1.0 / a.shape[0]
    mean = jnp.sum(a, axis=0, keepdims=True) * inv_cnt
    var = jnp.sum(a * a, axis=0, keepdims=True) * inv_cnt - mean * mean
    scale = gamma * jax.lax.rsqrt(var + EPS)          # (1, C)
    shift = beta - mean * scale                        # (1, C)
    y = a * scale + shift
    return jnp.maximum(y, 0.0) if relu else y


def _mxu_dot(a, w_bf16):
    # bf16 operands, f32 accumulation: native single-pass MXU rate.
    return jnp.dot(a.astype(jnp.bfloat16), w_bf16,
                   preferred_element_type=jnp.float32)


def bottleneck_kernel(
    n, ho, wo,                   # static python ints (closed over via partial)
    x_ref,                       # (rows, Cin)       bf16, stride pre-applied
    w1c_ref,                     # (Cin, c1 + c3)    bf16  [w1 | w_shortcut]
    g1_ref, b1_ref,              # (1, c1)           f32
    w2_ref,                      # (9*c1, c2)        bf16  (3x3 taps flattened)
    g2_ref, b2_ref,              # (1, c2)           f32
    w3_ref,                      # (c2, c3)          f32-> bf16
    g3_ref, b3_ref,              # (1, c3)           f32
    gsc_ref, bsc_ref,            # (1, c3)           f32
    out_ref,                     # (rows, c3)        f32
):
    c1 = g1_ref.shape[1]
    rows = n * ho * wo

    # ---- fused conv1 + shortcut: one MXU pass over x -----------------------
    a = _mxu_dot(x_ref[...], w1c_ref[...])            # (rows, c1 + c3) f32
    a1 = a[:, :c1]
    asc = a[:, c1:]

    # ---- BN + ReLU (main branch, stage 1) ----------------------------------
    y1 = _bn_relu(a1, g1_ref[...], b1_ref[...])       # (rows, c1) f32

    # ---- 3x3 conv, stride 1, pad 1, as a single im2col matmul --------------
    y1_4d = y1.reshape(n, ho, wo, c1)
    zr = jnp.zeros((n, 1, wo, c1), jnp.float32)
    yp = jnp.concatenate([zr, y1_4d, zr], axis=1)     # pad H
    zc = jnp.zeros((n, ho + 2, 1, c1), jnp.float32)
    yp = jnp.concatenate([zc, yp, zc], axis=2)        # pad W
    taps = [yp[:, di:di + ho, dj:dj + wo, :]
            for di in range(3) for dj in range(3)]    # tap order matches w2 rows
    col = jnp.concatenate(taps, axis=-1).reshape(rows, 9 * c1)
    a2 = _mxu_dot(col, w2_ref[...])                   # (rows, c2) f32
    y2 = _bn_relu(a2, g2_ref[...], b2_ref[...])

    # ---- 1x1 conv -> BN -> ReLU (stage 3) -----------------------------------
    a3 = _mxu_dot(y2, w3_ref[...])                    # (rows, c3) f32
    y3 = _bn_relu(a3, g3_ref[...], b3_ref[...])

    # ---- shortcut BN (no ReLU), residual add, final ReLU --------------------
    sc = _bn_relu(asc, gsc_ref[...], bsc_ref[...], relu=False)
    out_ref[...] = jnp.maximum(y3 + sc, 0.0)


def bottleneck_forward(x_nchw, params, stride):
    """x_nchw: (N, Cin, H, W) f32 -> (N, c3, H/stride, W/stride) f32."""
    # NCHW -> NHWC, stride-s spatial subsample (exact for 1x1 convs), flatten
    # to (rows, Cin) and cast to bf16 (halves the activation DMA bytes).
    x = jnp.transpose(x_nchw, (0, 2, 3, 1))
    xs = x[:, ::stride, ::stride, :]
    n, ho, wo, cin = xs.shape
    rows = n * ho * wo
    xs2 = xs.reshape(rows, cin).astype(jnp.bfloat16)

    c1 = params["w1"].shape[1]
    c2 = params["w2"].shape[3]
    c3 = params["w3"].shape[1]

    # Weight prep (pure layout, done once outside the kernel).
    w1c = jnp.concatenate([params["w1"], params["wsc"]], axis=1).astype(jnp.bfloat16)
    w2f = params["w2"].reshape(9 * c1, c2).astype(jnp.bfloat16)  # (kh,kw,ci)-major rows
    w3 = params["w3"].astype(jnp.bfloat16)

    vmem = pl.BlockSpec(memory_space=pltpu.MemorySpace.VMEM)
    args = (
        xs2, w1c,
        params["g1"], params["b1"],
        w2f, params["g2"], params["b2"],
        w3, params["g3"], params["b3"],
        params["gsc"], params["bsc"],
    )
    out2d = pl.pallas_call(
        partial(bottleneck_kernel, n, ho, wo),
        out_shape=jax.ShapeDtypeStruct((rows, c3), jnp.float32),
        in_specs=[vmem] * len(args),
        out_specs=vmem,
        # Re-derive this budget when using ResNet-scale tiles (v7x: 64 MiB phys).
        compiler_params=pltpu.CompilerParams(vmem_limit_bytes=32 * 1024 * 1024),
    )(*args)
    out_nhwc = out2d.reshape(n, ho, wo, c3)
    return jnp.transpose(out_nhwc, (0, 3, 1, 2))      # NHWC -> NCHW


# ----------------------------- parameter init -------------------------------
def init_params(key, in_channel, filters):
    c1, c2, c3 = filters
    ks = jax.random.split(key, 12)

    def nrm(k, shape, scale=0.1):
        return (scale * jax.random.normal(k, shape)).astype(jnp.float32)

    return {
        "w1": nrm(ks[0], (in_channel, c1)),
        "g1": 1.0 + nrm(ks[1], (1, c1)), "b1": nrm(ks[2], (1, c1)),
        "w2": nrm(ks[3], (3, 3, c1, c2)),
        "g2": 1.0 + nrm(ks[4], (1, c2)), "b2": nrm(ks[5], (1, c2)),
        "w3": nrm(ks[6], (c2, c3)),
        "g3": 1.0 + nrm(ks[7], (1, c3)), "b3": nrm(ks[8], (1, c3)),
        "wsc": nrm(ks[9], (in_channel, c3)),
        "gsc": 1.0 + nrm(ks[10], (1, c3)), "bsc": nrm(ks[11], (1, c3)),
    }


# ------------------------- plain-JAX reference check ------------------------
def _bn_ref_nchw(a, g, b):
    mean = jnp.mean(a, axis=(0, 2, 3), keepdims=True)
    var = jnp.mean((a - mean) ** 2, axis=(0, 2, 3), keepdims=True)
    return (a - mean) / jnp.sqrt(var + EPS) * g.reshape(1, -1, 1, 1) + b.reshape(1, -1, 1, 1)


def _q(v):
    # Matched-precision reference: the kernel feeds the MXU bf16 operands with
    # f32 accumulation, so round conv operands to bf16 here as well.
    return v.astype(jnp.bfloat16).astype(jnp.float32)


def bottleneck_ref(x_nchw, params, s):
    def conv(x, w_oihw, stride, pad):
        return jax.lax.conv_general_dilated(
            _q(x), _q(w_oihw), window_strides=(stride, stride), padding=pad,
            dimension_numbers=("NCHW", "OIHW", "NCHW"),
            precision=jax.lax.Precision.HIGHEST,
        )

    w1 = params["w1"].T[:, :, None, None]                 # (c1, Cin, 1, 1)
    w2 = jnp.transpose(params["w2"], (3, 2, 0, 1))        # (c2, c1, 3, 3)
    w3 = params["w3"].T[:, :, None, None]                 # (c3, c2, 1, 1)
    wsc = params["wsc"].T[:, :, None, None]               # (c3, Cin, 1, 1)

    y = jax.nn.relu(_bn_ref_nchw(conv(x_nchw, w1, s, "VALID"), params["g1"], params["b1"]))
    y = jax.nn.relu(_bn_ref_nchw(conv(y, w2, 1, ((1, 1), (1, 1))), params["g2"], params["b2"]))
    y = jax.nn.relu(_bn_ref_nchw(conv(y, w3, 1, "VALID"), params["g3"], params["b3"]))
    sc = _bn_ref_nchw(conv(x_nchw, wsc, s, "VALID"), params["gsc"], params["bsc"])
    return jax.nn.relu(y + sc)


if __name__ == "__main__":
    key = jax.random.PRNGKey(0)
    kx, kp = jax.random.split(key)

    in_channel, filters, s = 4, (4, 4, 8), 2
    x = jax.random.normal(kx, (2, in_channel, 16, 16), dtype=jnp.float32)
    params = init_params(kp, in_channel, filters)

    out = bottleneck_forward(x, params, s)
    out = jax.block_until_ready(out)

    assert out.shape == (2, filters[2], 8, 8), out.shape
    ref = bottleneck_ref(x, params, s)
    max_err = float(jnp.max(jnp.abs(out - ref)))
    assert max_err < 1e-2, f"mismatch vs reference: {max_err}"

    print("KERNEL_OK")
</pallas_src>

<mosaic_0001>
module attributes {stable_mosaic.version = 11 : i64} {
  func.func @bottleneck_kernel(%arg0: memref<128x4xbf16, #tpu.memory_space<vmem>>, %arg1: memref<4x12xbf16, #tpu.memory_space<vmem>>, %arg2: memref<1x4xf32, #tpu.memory_space<vmem>>, %arg3: memref<1x4xf32, #tpu.memory_space<vmem>>, %arg4: memref<36x4xbf16, #tpu.memory_space<vmem>>, %arg5: memref<1x4xf32, #tpu.memory_space<vmem>>, %arg6: memref<1x4xf32, #tpu.memory_space<vmem>>, %arg7: memref<4x8xbf16, #tpu.memory_space<vmem>>, %arg8: memref<1x8xf32, #tpu.memory_space<vmem>>, %arg9: memref<1x8xf32, #tpu.memory_space<vmem>>, %arg10: memref<1x8xf32, #tpu.memory_space<vmem>>, %arg11: memref<1x8xf32, #tpu.memory_space<vmem>>, %arg12: memref<128x8xf32, #tpu.memory_space<vmem>>) attributes {dimension_semantics = [], scalar_prefetch = 0 : i64, scratch_operands = 0 : i64, tpu.core_type = #tpu.core_type<tc>} {
    %c0 = arith.constant 0 : index
    %c0_0 = arith.constant 0 : index
    %0 = vector.load %arg0[%c0, %c0_0] : memref<128x4xbf16, #tpu.memory_space<vmem>>, vector<128x4xbf16>
    %c0_1 = arith.constant 0 : index
    %c0_2 = arith.constant 0 : index
    %1 = vector.load %arg1[%c0_1, %c0_2] : memref<4x12xbf16, #tpu.memory_space<vmem>>, vector<4x12xbf16>
    %cst = arith.constant dense<0.000000e+00> : vector<128x12xf32>
    %2 = tpu.matmul %0, %1, %cst {dimension_numbers = #tpu.dot_dimension_numbers<[1], [0], [0], [1], [0, 0, 1, 1], [], []>} : vector<128x4xbf16>, vector<4x12xbf16>, vector<128x12xf32> -> vector<128x12xf32>
    %3 = vector.extract_strided_slice %2 {offsets = [0, 0], sizes = [128, 4], strides = [1, 1]} : vector<128x12xf32> to vector<128x4xf32>
    %4 = vector.extract_strided_slice %2 {offsets = [0, 4], sizes = [128, 8], strides = [1, 1]} : vector<128x12xf32> to vector<128x8xf32>
    %c0_3 = arith.constant 0 : index
    %c0_4 = arith.constant 0 : index
    %5 = vector.load %arg2[%c0_3, %c0_4] : memref<1x4xf32, #tpu.memory_space<vmem>>, vector<1x4xf32>
    %c0_5 = arith.constant 0 : index
    %c0_6 = arith.constant 0 : index
    %6 = vector.load %arg3[%c0_5, %c0_6] : memref<1x4xf32, #tpu.memory_space<vmem>>, vector<1x4xf32>
    %cst_7 = arith.constant dense<0.000000e+00> : vector<4xf32>
    %7 = vector.multi_reduction <add>, %3, %cst_7 [0] : vector<128x4xf32> to vector<4xf32>
    %8 = vector.shape_cast %7 : vector<4xf32> to vector<1x4xf32>
    %cst_8 = arith.constant 7.812500e-03 : f32
    %9 = vector.broadcast %cst_8 : f32 to vector<1x4xf32>
    %10 = arith.mulf %8, %9 : vector<1x4xf32>
    %11 = arith.mulf %3, %3 : vector<128x4xf32>
    %cst_9 = arith.constant dense<0.000000e+00> : vector<4xf32>
    %12 = vector.multi_reduction <add>, %11, %cst_9 [0] : vector<128x4xf32> to vector<4xf32>
    %13 = vector.shape_cast %12 : vector<4xf32> to vector<1x4xf32>
    %cst_10 = arith.constant 7.812500e-03 : f32
    %14 = vector.broadcast %cst_10 : f32 to vector<1x4xf32>
    %15 = arith.mulf %13, %14 : vector<1x4xf32>
    %16 = arith.mulf %10, %10 : vector<1x4xf32>
    %17 = arith.subf %15, %16 : vector<1x4xf32>
    %cst_11 = arith.constant 9.99999974E-6 : f32
    %18 = vector.broadcast %cst_11 : f32 to vector<1x4xf32>
    %19 = arith.addf %17, %18 : vector<1x4xf32>
    %20 = math.rsqrt %19 : vector<1x4xf32>
    %21 = arith.mulf %5, %20 : vector<1x4xf32>
    %22 = arith.mulf %10, %21 : vector<1x4xf32>
    %23 = arith.subf %6, %22 : vector<1x4xf32>
    %24 = vector.broadcast %21 : vector<1x4xf32> to vector<128x4xf32>
    %25 = arith.mulf %3, %24 : vector<128x4xf32>
    %26 = vector.broadcast %23 : vector<1x4xf32> to vector<128x4xf32>
    %27 = arith.addf %25, %26 : vector<128x4xf32>
    %cst_12 = arith.constant 0.000000e+00 : f32
    %28 = vector.broadcast %cst_12 : f32 to vector<128x4xf32>
    %29 = arith.maximumf %27, %28 : vector<128x4xf32>
    %30 = vector.shape_cast %29 : vector<128x4xf32> to vector<2x8x8x4xf32>
    %cst_13 = arith.constant 0.000000e+00 : f32
    %31 = vector.broadcast %cst_13 : f32 to vector<2x1x8x4xf32>
    %32 = tpu.concatenate %31, %30, %31 in 1 : vector<2x1x8x4xf32>, vector<2x8x8x4xf32>, vector<2x1x8x4xf32> -> vector<2x10x8x4xf32>
    %cst_14 = arith.constant 0.000000e+00 : f32
    %33 = vector.broadcast %cst_14 : f32 to vector<2x10x1x4xf32>
    %34 = tpu.concatenate %33, %32, %33 in 2 : vector<2x10x1x4xf32>, vector<2x10x8x4xf32>, vector<2x10x1x4xf32> -> vector<2x10x10x4xf32>
    %35 = vector.extract_strided_slice %34 {offsets = [0, 0, 0, 0], sizes = [2, 8, 8, 4], strides = [1, 1, 1, 1]} : vector<2x10x10x4xf32> to vector<2x8x8x4xf32>
    %36 = vector.extract_strided_slice %34 {offsets = [0, 0, 1, 0], sizes = [2, 8, 8, 4], strides = [1, 1, 1, 1]} : vector<2x10x10x4xf32> to vector<2x8x8x4xf32>
    %37 = vector.extract_strided_slice %34 {offsets = [0, 0, 2, 0], sizes = [2, 8, 8, 4], strides = [1, 1, 1, 1]} : vector<2x10x10x4xf32> to vector<2x8x8x4xf32>
    %38 = vector.extract_strided_slice %34 {offsets = [0, 1, 0, 0], sizes = [2, 8, 8, 4], strides = [1, 1, 1, 1]} : vector<2x10x10x4xf32> to vector<2x8x8x4xf32>
    %39 = vector.extract_strided_slice %34 {offsets = [0, 1, 1, 0], sizes = [2, 8, 8, 4], strides = [1, 1, 1, 1]} : vector<2x10x10x4xf32> to vector<2x8x8x4xf32>
    %40 = vector.extract_strided_slice %34 {offsets = [0, 1, 2, 0], sizes = [2, 8, 8, 4], strides = [1, 1, 1, 1]} : vector<2x10x10x4xf32> to vector<2x8x8x4xf32>
    %41 = vector.extract_strided_slice %34 {offsets = [0, 2, 0, 0], sizes = [2, 8, 8, 4], strides = [1, 1, 1, 1]} : vector<2x10x10x4xf32> to vector<2x8x8x4xf32>
    %42 = vector.extract_strided_slice %34 {offsets = [0, 2, 1, 0], sizes = [2, 8, 8, 4], strides = [1, 1, 1, 1]} : vector<2x10x10x4xf32> to vector<2x8x8x4xf32>
    %43 = vector.extract_strided_slice %34 {offsets = [0, 2, 2, 0], sizes = [2, 8, 8, 4], strides = [1, 1, 1, 1]} : vector<2x10x10x4xf32> to vector<2x8x8x4xf32>
    %44 = tpu.concatenate %35, %36, %37, %38, %39, %40, %41, %42, %43 in 3 : vector<2x8x8x4xf32>, vector<2x8x8x4xf32>, vector<2x8x8x4xf32>, vector<2x8x8x4xf32>, vector<2x8x8x4xf32>, vector<2x8x8x4xf32>, vector<2x8x8x4xf32>, vector<2x8x8x4xf32>, vector<2x8x8x4xf32> -> vector<2x8x8x36xf32>
    %45 = vector.shape_cast %44 : vector<2x8x8x36xf32> to vector<128x36xf32>
    %c0_15 = arith.constant 0 : index
    %c0_16 = arith.constant 0 : index
    %46 = vector.load %arg4[%c0_15, %c0_16] : memref<36x4xbf16, #tpu.memory_space<vmem>>, vector<36x4xbf16>
    %47 = arith.truncf %45 : vector<128x36xf32> to vector<128x36xbf16>
    %cst_17 = arith.constant dense<0.000000e+00> : vector<128x4xf32>
    %48 = tpu.matmul %47, %46, %cst_17 {dimension_numbers = #tpu.dot_dimension_numbers<[1], [0], [0], [1], [0, 0, 1, 1], [], []>} : vector<128x36xbf16>, vector<36x4xbf16>, vector<128x4xf32> -> vector<128x4xf32>
    %c0_18 = arith.constant 0 : index
    %c0_19 = arith.constant 0 : index
    %49 = vector.load %arg5[%c0_18, %c0_19] : memref<1x4xf32, #tpu.memory_space<vmem>>, vector<1x4xf32>
    %c0_20 = arith.constant 0 : index
    %c0_21 = arith.constant 0 : index
    %50 = vector.load %arg6[%c0_20, %c0_21] : memref<1x4xf32, #tpu.memory_space<vmem>>, vector<1x4xf32>
    %cst_22 = arith.constant dense<0.000000e+00> : vector<4xf32>
    %51 = vector.multi_reduction <add>, %48, %cst_22 [0] : vector<128x4xf32> to vector<4xf32>
    %52 = vector.shape_cast %51 : vector<4xf32> to vector<1x4xf32>
    %cst_23 = arith.constant 7.812500e-03 : f32
    %53 = vector.broadcast %cst_23 : f32 to vector<1x4xf32>
    %54 = arith.mulf %52, %53 : vector<1x4xf32>
    %55 = arith.mulf %48, %48 : vector<128x4xf32>
    %cst_24 = arith.constant dense<0.000000e+00> : vector<4xf32>
    %56 = vector.multi_reduction <add>, %55, %cst_24 [0] : vector<128x4xf32> to vector<4xf32>
    %57 = vector.shape_cast %56 : vector<4xf32> to vector<1x4xf32>
    %cst_25 = arith.constant 7.812500e-03 : f32
    %58 = vector.broadcast %cst_25 : f32 to vector<1x4xf32>
    %59 = arith.mulf %57, %58 : vector<1x4xf32>
    %60 = arith.mulf %54, %54 : vector<1x4xf32>
    %61 = arith.subf %59, %60 : vector<1x4xf32>
    %cst_26 = arith.constant 9.99999974E-6 : f32
    %62 = vector.broadcast %cst_26 : f32 to vector<1x4xf32>
    %63 = arith.addf %61, %62 : vector<1x4xf32>
    %64 = math.rsqrt %63 : vector<1x4xf32>
    %65 = arith.mulf %49, %64 : vector<1x4xf32>
    %66 = arith.mulf %54, %65 : vector<1x4xf32>
    %67 = arith.subf %50, %66 : vector<1x4xf32>
    %68 = vector.broadcast %65 : vector<1x4xf32> to vector<128x4xf32>
    %69 = arith.mulf %48, %68 : vector<128x4xf32>
    %70 = vector.broadcast %67 : vector<1x4xf32> to vector<128x4xf32>
    %71 = arith.addf %69, %70 : vector<128x4xf32>
    %cst_27 = arith.constant 0.000000e+00 : f32
    %72 = vector.broadcast %cst_27 : f32 to vector<128x4xf32>
    %73 = arith.maximumf %71, %72 : vector<128x4xf32>
    %c0_28 = arith.constant 0 : index
    %c0_29 = arith.constant 0 : index
    %74 = vector.load %arg7[%c0_28, %c0_29] : memref<4x8xbf16, #tpu.memory_space<vmem>>, vector<4x8xbf16>
    %75 = arith.truncf %73 : vector<128x4xf32> to vector<128x4xbf16>
    %cst_30 = arith.constant dense<0.000000e+00> : vector<128x8xf32>
    %76 = tpu.matmul %75, %74, %cst_30 {dimension_numbers = #tpu.dot_dimension_numbers<[1], [0], [0], [1], [0, 0, 1, 1], [], []>} : vector<128x4xbf16>, vector<4x8xbf16>, vector<128x8xf32> -> vector<128x8xf32>
    %c0_31 = arith.constant 0 : index
    %c0_32 = arith.constant 0 : index
    %77 = vector.load %arg8[%c0_31, %c0_32] : memref<1x8xf32, #tpu.memory_space<vmem>>, vector<1x8xf32>
    %c0_33 = arith.constant 0 : index
    %c0_34 = arith.constant 0 : index
    %78 = vector.load %arg9[%c0_33, %c0_34] : memref<1x8xf32, #tpu.memory_space<vmem>>, vector<1x8xf32>
    %cst_35 = arith.constant dense<0.000000e+00> : vector<8xf32>
    %79 = vector.multi_reduction <add>, %76, %cst_35 [0] : vector<128x8xf32> to vector<8xf32>
    %80 = vector.shape_cast %79 : vector<8xf32> to vector<1x8xf32>
    %cst_36 = arith.constant 7.812500e-03 : f32
    %81 = vector.broadcast %cst_36 : f32 to vector<1x8xf32>
    %82 = arith.mulf %80, %81 : vector<1x8xf32>
    %83 = arith.mulf %76, %76 : vector<128x8xf32>
    %cst_37 = arith.constant dense<0.000000e+00> : vector<8xf32>
    %84 = vector.multi_reduction <add>, %83, %cst_37 [0] : vector<128x8xf32> to vector<8xf32>
    %85 = vector.shape_cast %84 : vector<8xf32> to vector<1x8xf32>
    %cst_38 = arith.constant 7.812500e-03 : f32
    %86 = vector.broadcast %cst_38 : f32 to vector<1x8xf32>
    %87 = arith.mulf %85, %86 : vector<1x8xf32>
    %88 = arith.mulf %82, %82 : vector<1x8xf32>
    %89 = arith.subf %87, %88 : vector<1x8xf32>
    %cst_39 = arith.constant 9.99999974E-6 : f32
    %90 = vector.broadcast %cst_39 : f32 to vector<1x8xf32>
    %91 = arith.addf %89, %90 : vector<1x8xf32>
    %92 = math.rsqrt %91 : vector<1x8xf32>
    %93 = arith.mulf %77, %92 : vector<1x8xf32>
    %94 = arith.mulf %82, %93 : vector<1x8xf32>
    %95 = arith.subf %78, %94 : vector<1x8xf32>
    %96 = vector.broadcast %93 : vector<1x8xf32> to vector<128x8xf32>
    %97 = arith.mulf %76, %96 : vector<128x8xf32>
    %98 = vector.broadcast %95 : vector<1x8xf32> to vector<128x8xf32>
    %99 = arith.addf %97, %98 : vector<128x8xf32>
    %cst_40 = arith.constant 0.000000e+00 : f32
    %100 = vector.broadcast %cst_40 : f32 to vector<128x8xf32>
    %101 = arith.maximumf %99, %100 : vector<128x8xf32>
    %c0_41 = arith.constant 0 : index
    %c0_42 = arith.constant 0 : index
    %102 = vector.load %arg10[%c0_41, %c0_42] : memref<1x8xf32, #tpu.memory_space<vmem>>, vector<1x8xf32>
    %c0_43 = arith.constant 0 : index
    %c0_44 = arith.constant 0 : index
    %103 = vector.load %arg11[%c0_43, %c0_44] : memref<1x8xf32, #tpu.memory_space<vmem>>, vector<1x8xf32>
    %cst_45 = arith.constant dense<0.000000e+00> : vector<8xf32>
    %104 = vector.multi_reduction <add>, %4, %cst_45 [0] : vector<128x8xf32> to vector<8xf32>
    %105 = vector.shape_cast %104 : vector<8xf32> to vector<1x8xf32>
    %cst_46 = arith.constant 7.812500e-03 : f32
    %106 = vector.broadcast %cst_46 : f32 to vector<1x8xf32>
    %107 = arith.mulf %105, %106 : vector<1x8xf32>
    %108 = arith.mulf %4, %4 : vector<128x8xf32>
    %cst_47 = arith.constant dense<0.000000e+00> : vector<8xf32>
    %109 = vector.multi_reduction <add>, %108, %cst_47 [0] : vector<128x8xf32> to vector<8xf32>
    %110 = vector.shape_cast %109 : vector<8xf32> to vector<1x8xf32>
    %cst_48 = arith.constant 7.812500e-03 : f32
    %111 = vector.broadcast %cst_48 : f32 to vector<1x8xf32>
    %112 = arith.mulf %110, %111 : vector<1x8xf32>
    %113 = arith.mulf %107, %107 : vector<1x8xf32>
    %114 = arith.subf %112, %113 : vector<1x8xf32>
    %cst_49 = arith.constant 9.99999974E-6 : f32
    %115 = vector.broadcast %cst_49 : f32 to vector<1x8xf32>
    %116 = arith.addf %114, %115 : vector<1x8xf32>
    %117 = math.rsqrt %116 : vector<1x8xf32>
    %118 = arith.mulf %102, %117 : vector<1x8xf32>
    %119 = arith.mulf %107, %118 : vector<1x8xf32>
    %120 = arith.subf %103, %119 : vector<1x8xf32>
    %121 = vector.broadcast %118 : vector<1x8xf32> to vector<128x8xf32>
    %122 = arith.mulf %4, %121 : vector<128x8xf32>
    %123 = vector.broadcast %120 : vector<1x8xf32> to vector<128x8xf32>
    %124 = arith.addf %122, %123 : vector<128x8xf32>
    %125 = arith.addf %101, %124 : vector<128x8xf32>
    %cst_50 = arith.constant 0.000000e+00 : f32
    %126 = vector.broadcast %cst_50 : f32 to vector<128x8xf32>
    %127 = arith.maximumf %125, %126 : vector<128x8xf32>
    %c0_51 = arith.constant 0 : index
    %c0_52 = arith.constant 0 : index
    %128 = vector.load %arg12[%c0_51, %c0_52] : memref<128x8xf32, #tpu.memory_space<vmem>>, vector<128x8xf32>
    tpu.vector_store %arg12[%c0_51, %c0_52], %127 {strides = array<i32>} : memref<128x8xf32, #tpu.memory_space<vmem>>, vector<128x8xf32>,
    return
  }
}

</mosaic_0001>

<bundles_post_ra>
// kernel: tpu_custom_call.1
= control target key start
LH: loop header
LB: loop body
LE: loop exit
PB: predicated region body
PF: predicated region fallthrough
CT: control target
= control target key end

     0   :  { %vm124_vm0 = vcmask 1041408   ;;  %vm99_vm1 = vcmask 31744   ;;  %vm1587_vm2 = vcmask 97312   ;;  %vm392_vm6 = vcmask 1040384   ;;  %s2241_s23 = smov 16   ;;  %s2242_s24 = smov 32   ;;  %s3869_s1 = inlined_call_operand.vmem [shape: bf16[4,12], index: 1, kind: input, shape index: {}]   ;;  %s3870_s0 = inlined_call_operand.vmem [shape: bf16[128,4], index: 0, kind: input, shape index: {}]   ;;  %s3871_s2 = inlined_call_operand.vmem [shape: f32[1,4], index: 2, kind: input, shape index: {}]   ;;  %s3872_s3 = inlined_call_operand.vmem [shape: f32[1,4], index: 3, kind: input, shape index: {}]   ;;  %s3873_s4 = inlined_call_operand.vmem [shape: bf16[36,4], index: 4, kind: input, shape index: {}]   ;;  %s3874_s10 = inlined_call_operand.vmem [shape: f32[1,8], index: 10, kind: input, shape index: {}]   ;;  %s3875_s7 = inlined_call_operand.vmem [shape: bf16[4,8], index: 7, kind: input, shape index: {}]   ;;  %s3876_s5 = inlined_call_operand.vmem [shape: f32[1,4], index: 5, kind: input, shape index: {}]   ;;  %s3877_s6 = inlined_call_operand.vmem [shape: f32[1,4], index: 6, kind: input, shape index: {}]   ;;  %s3878_s11 = inlined_call_operand.vmem [shape: f32[1,8], index: 11, kind: input, shape index: {}]   ;;  %s3879_s8 = inlined_call_operand.vmem [shape: f32[1,8], index: 8, kind: input, shape index: {}]   ;;  %s3880_s9 = inlined_call_operand.vmem [shape: f32[1,8], index: 9, kind: input, shape index: {}]   ;;  %s3881_s12 = inlined_call_operand.vmem [shape: f32[128,8], index: 12, kind: output, shape index: {}]  }
   0x1   :  { %v58_v0 = vld [vmem:[%s3869_s1] sm:$0x3]  ;;  %v1911_v3 = vld [vmem:[%s3870_s0 + $0x8] sm:$0xff]  ;;  %v1912_v4 = vld [vmem:[%s3870_s0 + $0x10] sm:$0xff]  ;;  %vm457_vm7 = vcmask 1046528   ;;  %vm548_vm8 = vcmask 1045504  }
   0x2   :  { %v126_v1 = vsel %vm124_vm0, %v58_v0, 0  ;;  %v1910_v2 = vld [vmem:[%s3870_s0] sm:$0xff]  ;;  %v1913_v5 = vld [vmem:[%s3870_s0 + $0x18] sm:$0xff]  ;;  %v1915_v8 = vld [vmem:[%s3870_s0 + $0x28] sm:$0xff]  ;;  %s2243_s25 = smov 4   ;;  %s2244_s26 = smov 8  }
   0x3   :  { %135 = vmatpush.bf16.msra.mxu0 %v126_v1  ;;  %1920 = vmatpush.bf16.msra.mxu3 %v126_v1  ;;  %v1917_v6 = vld [vmem:[%s3870_s0 + $0x38] sm:$0xff]  ;;  %v1914_v7 = vld [vmem:[%s3870_s0 + $0x20] sm:$0xff]  ;;  %v1916_v9 = vld [vmem:[%s3870_s0 + $0x30] sm:$0xff]  ;;  %s2245_s27 = smov 28   ;;  %s2246_s28 = smov 20   ;;  %vm949_vm9 = vcmask 64512  }
   0x4   :  { %vm965_vm11 = vcmask 97280   ;;  %vm982_vm12 = vcmask 130048   ;;  %vm999_vm14 = vcmask 162816  }
   0x6   :  { %1878 = vmatmul.msk.bf16.vlgmr.msra.gmra.mxu0 %vm99_vm1, %v1910_v2  ;;  %1885 = vmatmul.msk.bf16.vlgmr.msra.gmra.mxu3 %vm99_vm1, %v1917_v6 }
  0x16   :  { %1879 = vmatmul.msk.bf16.gmra.mxu0 %vm99_vm1, %v1911_v3 }
  0x26   :  { %1880 = vmatmul.msk.bf16.gmra.mxu0 %vm99_vm1, %v1912_v4 }
  0x36   :  { %1881 = vmatmul.msk.bf16.gmra.mxu0 %vm99_vm1, %v1913_v5 }
  0x46   :  { %1882 = vmatmul.msk.bf16.gmra.mxu0 %vm99_vm1, %v1914_v7 }
  0x56   :  { %1883 = vmatmul.msk.bf16.gmra.mxu0 %vm99_vm1, %v1915_v8 }
  0x66   :  { %1884 = vmatmul.msk.bf16.gmra.mxu0 %vm99_vm1, %v1916_v9 }
  0x83   :  { %v2349_v10 = vpop.f32.mrf.mxu0 }
  0x84   :  { %3908 = vst [vmem:[#allocation2_spill] sm:$0xff] %v2349_v10  ;;  %v217_v11 = vmul.f32 %v2349_v10, %v2349_v10  ;;  %v179_v51 = vsel %vm99_vm1, %v2349_v10, 0.0 }
  0x86   :  { %v1626_v14 = vsel %vm1587_vm2, %v217_v11, 0.0  ;;  %v233_v56 = vsel %vm99_vm1, %v217_v11, 0.0 }
  0x8b   :  { %v2353_v12 = vpop.f32.mrf.mxu0 }
  0x8c   :  { %v218_v13 = vmul.f32 %v2353_v12, %v2353_v12  ;;  %v180_v49 = vsel %vm99_vm1, %v2353_v12, 0.0 }
  0x8d   :  { %v181_v55 = vadd.f32 %v180_v49, %v179_v51 }
  0x8e   :  { %v1627_v15 = vsel %vm1587_vm2, %v218_v13, 0.0  ;;  %v234_v52 = vsel %vm99_vm1, %v218_v13, 0.0 }
  0x8f   :  { %v1628_v16 = vadd.f32 %v1627_v15, %v1626_v14  ;;  %v235_v60 = vadd.f32 %v234_v52, %v233_v56 }
  0x93   :  { %v2359_v17 = vpop.f32.mrf.mxu0 }
  0x94   :  { %v219_v18 = vmul.f32 %v2359_v17, %v2359_v17  ;;  %v182_v53 = vsel %vm99_vm1, %v2359_v17, 0.0 }
  0x95   :  { %v183_v61 = vadd.f32 %v182_v53, %v181_v55 }
  0x96   :  { %v1629_v19 = vsel %vm1587_vm2, %v219_v18, 0.0  ;;  %v236_v57 = vsel %vm99_vm1, %v219_v18, 0.0 }
  0x97   :  { %v1630_v20 = vadd.f32 %v1629_v19, %v1628_v16  ;;  %v237_v1 = vadd.f32 %v236_v57, %v235_v60 }
  0x9b   :  { %v2364_v21 = vpop.f32.mrf.mxu0 }
  0x9c   :  { %v220_v22 = vmul.f32 %v2364_v21, %v2364_v21  ;;  %v184_v58 = vsel %vm99_vm1, %v2364_v21, 0.0 }
  0x9d   :  { %v185_v2 = vadd.f32 %v184_v58, %v183_v61 }
  0x9e   :  { %v1631_v23 = vsel %vm1587_vm2, %v220_v22, 0.0  ;;  %v238_v63 = vsel %vm99_vm1, %v220_v22, 0.0 }
  0x9f   :  { %v1632_v24 = vadd.f32 %v1631_v23, %v1630_v20  ;;  %v239_v5 = vadd.f32 %v238_v63, %v237_v1 }
  0xa3   :  { %v2369_v25 = vpop.f32.mrf.mxu0 }
  0xa4   :  { %v221_v26 = vmul.f32 %v2369_v25, %v2369_v25  ;;  %v186_v0 = vsel %vm99_vm1, %v2369_v25, 0.0 }
  0xa5   :  { %v187_v6 = vadd.f32 %v186_v0, %v185_v2 }
  0xa6   :  { %v1633_v27 = vsel %vm1587_vm2, %v221_v26, 0.0  ;;  %v240_v3 = vsel %vm99_vm1, %v221_v26, 0.0 }
  0xa7   :  { %v1634_v28 = vadd.f32 %v1633_v27, %v1632_v24  ;;  %v241_v13 = vadd.f32 %v240_v3, %v239_v5 }
  0xab   :  { %v2374_v29 = vpop.f32.mrf.mxu0 }
  0xac   :  { %v222_v30 = vmul.f32 %v2374_v29, %v2374_v29  ;;  %v188_v4 = vsel %vm99_vm1, %v2374_v29, 0.0 }
  0xad   :  { %v189_v14 = vadd.f32 %v188_v4, %v187_v6 }
  0xae   :  { %v1635_v31 = vsel %vm1587_vm2, %v222_v30, 0.0  ;;  %v242_v8 = vsel %vm99_vm1, %v222_v30, 0.0 }
  0xaf   :  { %v1636_v32 = vadd.f32 %v1635_v31, %v1634_v28  ;;  %v243_v19 = vadd.f32 %v242_v8, %v241_v13  ;;  %v2435_v28 = vpop.f32.mrf.mxu3 }
  0xb0   :  { %3914 = vst [vmem:[#allocation8_spill] sm:$0xff] %v2435_v28  ;;  %v231_v60 = vmul.f32 %v2435_v28, %v2435_v28  ;;  %v206_v1 = vsel %vm99_vm1, %v2435_v28, 0.0 }
  0xb3   :  { %v2379_v33 = vpop.f32.mrf.mxu0 }
  0xb4   :  { %3909 = vst [vmem:[#allocation3_spill] sm:$0xff] %v2379_v33  ;;  %v223_v34 = vmul.f32 %v2379_v33, %v2379_v33  ;;  %v190_v9 = vsel %vm99_vm1, %v2379_v33, 0.0 }
  0xb5   :  { %v191_v20 = vadd.f32 %v190_v9, %v189_v14  ;;  %v260_v9 = vsel %vm99_vm1, %v231_v60, 0.0 }
  0xb6   :  { %v1637_v35 = vsel %vm1587_vm2, %v223_v34, 0.0  ;;  %v244_v15 = vsel %vm99_vm1, %v223_v34, 0.0 }
  0xb7   :  { %v1638_v36 = vadd.f32 %v1637_v35, %v1636_v32  ;;  %v245_v26 = vadd.f32 %v244_v15, %v243_v19  ;;  %v2455_v58 = vpop.f32.mrf.mxu3 }
  0xb8   :  { %3916 = vst [vmem:[#allocation10_spill] sm:$0xff] %v2455_v58  ;;  %v232_v2 = vmul.f32 %v2455_v58, %v2455_v58  ;;  %v208_v13 = vsel %vm99_vm1, %v2455_v58, 0.0 }
  0xba   :  { %v1655_v19 = vsel %vm1587_vm2, %v232_v2, 0.0 }
  0xbb   :  { %v2384_v37 = vpop.f32.mrf.mxu0 }
  0xbc   :  { %v224_v38 = vmul.f32 %v2384_v37, %v2384_v37  ;;  %v192_v16 = vsel %vm99_vm1, %v2384_v37, 0.0 }
  0xbd   :  { %v193_v27 = vadd.f32 %v192_v16, %v191_v20 }
  0xbe   :  { %v1639_v39 = vsel %vm1587_vm2, %v224_v38, 0.0  ;;  %v246_v23 = vsel %vm99_vm1, %v224_v38, 0.0 }
  0xbf   :  { %v1640_v40 = vadd.f32 %v1639_v39, %v1638_v36  ;;  %v247_v32 = vadd.f32 %v246_v23, %v245_v26 }
  0xc3   :  { %v2389_v41 = vpop.f32.mrf.mxu0 }
  0xc4   :  { %3910 = vst [vmem:[#allocation4_spill] sm:$0xff] %v2389_v41  ;;  %v225_v42 = vmul.f32 %v2389_v41, %v2389_v41  ;;  %v194_v24 = vsel %vm99_vm1, %v2389_v41, 0.0 }
  0xc5   :  { %v195_v34 = vadd.f32 %v194_v24, %v193_v27 }
  0xc6   :  { %v1641_v43 = vsel %vm1587_vm2, %v225_v42, 0.0  ;;  %v248_v30 = vsel %vm99_vm1, %v225_v42, 0.0 }
  0xc7   :  { %v1642_v44 = vadd.f32 %v1641_v43, %v1640_v40  ;;  %v249_v40 = vadd.f32 %v248_v30, %v247_v32 }
  0xcb   :  { %v2394_v45 = vpop.f32.mrf.mxu0 }
  0xcc   :  { %3911 = vst [vmem:[#allocation5_spill] sm:$0xff] %v2394_v45  ;;  %v226_v46 = vmul.f32 %v2394_v45, %v2394_v45  ;;  %v196_v31 = vsel %vm99_vm1, %v2394_v45, 0.0 }
  0xcd   :  { %v197_v43 = vadd.f32 %v196_v31, %v195_v34 }
  0xce   :  { %v1643_v47 = vsel %vm1587_vm2, %v226_v46, 0.0  ;;  %v250_v36 = vsel %vm99_vm1, %v226_v46, 0.0 }
  0xcf   :  { %v1644_v48 = vadd.f32 %v1643_v47, %v1642_v44 }
  0xd3   :  { %v2401_v50 = vpop.f32.mrf.mxu0 }
  0xd4   :  { %3912 = vst [vmem:[#allocation6_spill] sm:$0xff] %v2401_v50  ;;  %v227_v54 = vmul.f32 %v2401_v50, %v2401_v50  ;;  %v198_v38 = vsel %vm99_vm1, %v2401_v50, 0.0 }
  0xd5   :  { %v199_v49 = vadd.f32 %v198_v38, %v197_v43 }
  0xd6   :  { %v1645_v59 = vsel %vm1587_vm2, %v227_v54, 0.0  ;;  %v252_v44 = vsel %vm99_vm1, %v227_v54, 0.0 }
  0xd7   :  { %v1646_v62 = vadd.f32 %v1645_v59, %v1644_v48  ;;  %v251_v48 = vadd.f32 %v250_v36, %v249_v40 }
  0xd9   :  { %v253_v53 = vadd.f32 %v252_v44, %v251_v48 }
  0xdb   :  { %v2421_v7 = vpop.f32.mrf.mxu0 }
  0xdc   :  { %3913 = vst [vmem:[#allocation7_spill] sm:$0xff] %v2421_v7  ;;  %v228_v11 = vmul.f32 %v2421_v7, %v2421_v7  ;;  %v200_v42 = vsel %vm99_vm1, %v2421_v7, 0.0 }
  0xdd   :  { %v201_v55 = vadd.f32 %v200_v42, %v199_v49 }
  0xde   :  { %v1647_v18 = vsel %vm1587_vm2, %v228_v11, 0.0  ;;  %v254_v46 = vsel %vm99_vm1, %v228_v11, 0.0  ;;  %v1653_v11 = vsel %vm1587_vm2, %v231_v60, 0.0  ;;  %v178_v60 = vld [vmem:[%s3872_s3] sm:$0x1]  ;;  %s2239_s3 = smov 24  }
  0xdf   :  { %v1648_v22 = vadd.f32 %v1647_v18, %v1646_v62  ;;  %v255_v57 = vadd.f32 %v254_v46, %v253_v53  ;;  %v262_v18 = vsel %vm99_vm1, %v232_v2, 0.0 }
  0xe3   :  { %v2440_v35 = vpop.f32.mrf.mxu0 }
  0xe4   :  { %3915 = vst [vmem:[#allocation9_spill] sm:$0xff] %v2440_v35  ;;  %v229_v39 = vmul.f32 %v2440_v35, %v2440_v35  ;;  %v202_v52 = vsel %vm99_vm1, %v2440_v35, 0.0 }
  0xe5   :  { %v203_v59 = vadd.f32 %v202_v52, %v201_v55  ;;  %v177_v55 = vld [vmem:[%s3871_s2] sm:$0x1]  ;;  %s2238_s2 = smov 12  }
  0xe6   :  { %v1649_v47 = vsel %vm1587_vm2, %v229_v39, 0.0  ;;  %v256_v56 = vsel %vm99_vm1, %v229_v39, 0.0 }
  0xe7   :  { %v1650_v51 = vadd.f32 %v1649_v47, %v1648_v22  ;;  %v257_v0 = vadd.f32 %v256_v56, %v255_v57 }
  0xeb   :  { %v2457_v54 = vpop.f32.mrf.mxu0 }
  0xec   :  { %3917 = vst [vmem:[#allocation11_spill] sm:$0xff] %v2457_v54  ;;  %v204_v61 = vsel %vm99_vm1, %v2457_v54, 0.0  ;;  %v230_v62 = vmul.f32 %v2457_v54, %v2457_v54 }
  0xed   :  { %v205_v63 = vadd.f32 %v204_v61, %v203_v59 }
  0xee   :  { %v258_v3 = vsel %vm99_vm1, %v230_v62, 0.0  ;;  %v1651_v4 = vsel %vm1587_vm2, %v230_v62, 0.0 }
  0xef   :  { %v207_v5 = vadd.f32 %v206_v1, %v205_v63  ;;  %v259_v6 = vadd.f32 %v258_v3, %v257_v0  ;;  %v1652_v8 = vadd.f32 %v1651_v4, %v1650_v51 }
  0xf1   :  { %v209_v14 = vadd.f32 %v208_v13, %v207_v5  ;;  %v261_v15 = vadd.f32 %v260_v9, %v259_v6  ;;  %v1654_v16 = vadd.f32 %v1653_v11, %v1652_v8 }
  0xf3   :  { %v210_v20 = vrot.slane %v209_v14, 4  ;;  %v263_v22 = vadd.f32 %v262_v18, %v261_v15  ;;  %v2477_v23 = vadd.f32 %v1655_v19, %v1654_v16 }
  0xf5   :  { %3918 = vst [vmem:[#allocation12_spill] sm:$0xff] %v2477_v23  ;;  %v211_v24 = vadd.f32 %v210_v20, %v209_v14  ;;  %v264_v26 = vrot.slane %v263_v22, 4 }
  0xf7   :  { %v212_v27 = vrot.slane %v211_v24, 2  ;;  %v265_v30 = vadd.f32 %v264_v26, %v263_v22 }
  0xf9   :  { %v213_v31 = vadd.f32 %v212_v27, %v211_v24  ;;  %v266_v32 = vrot.slane %v265_v30, 2 }
  0xfb   :  { %v214_v34 = vrot.slane %v213_v31, 1  ;;  %v267_v36 = vadd.f32 %v266_v32, %v265_v30 }
  0xfd   :  { %v215_v38 = vadd.f32 %v214_v34, %v213_v31  ;;  %v268_v39 = vrot.slane %v267_v36, 1 }
  0xff   :  { %v216_v40 = vmul.f32 0.0078125, %v215_v38  ;;  %v269_v43 = vadd.f32 %v268_v39, %v267_v36 }
 0x101   :  { %v270_v44 = vmul.f32 0.0078125, %v269_v43  ;;  %v271_v42 = vmul.f32 %v216_v40, %v216_v40 }
 0x103   :  { %v272_v47 = vsub.f32 %v270_v44, %v271_v42 }
 0x105   :  { %v273_v48 = vadd.f32 1e-05, %v272_v47 }
 0x107   :  { %2230 = vrsqrt.f32 %v273_v48  ;;  %vm280_vm4 = vweird.f32 %v273_v48 }
 0x10d   :  { %v2231_v49 = vpop.eup %2230 }
 0x10e   :  { %v275_v51 = vmul.f32 %v2231_v49, %v273_v48  ;;  %vm281_vm3 = vweird.f32 %v2231_v49 }
 0x10f   :  { %vm282_vm5 = vmor %vm280_vm4, %vm281_vm3  ;;  %vm1033_vm3 = vcmask 228352   ;;  %vm1050_vm4 = vcmask 261120  }
 0x110   :  { %v276_v46 = vmul.f32 %v2231_v49, %v275_v51 }
 0x112   :  { %v277_v52 = vmul.f32 0.5, %v276_v46 }
 0x114   :  { %v278_v53 = vsub.f32 1.5, %v277_v52 }
 0x116   :  { %v279_v56 = vmul.f32 %v2231_v49, %v278_v53 }
 0x118   :  { %v283_v57 = vsel %vm282_vm5, %v2231_v49, %v279_v56  ;;  %vm1095_vm5 = vcmask 293888  }
 0x119   :  { %v284_v59 = vmul.f32 %v283_v57, %v177_v55 }
 0x11b   :  { %v285_v61 = vmul.f32 %v284_v59, %v216_v40  ;;  %v2485_v62 = vperm.slane %v284_v59, 0 }
 0x11d   :  { %v286_v63 = vsub.f32 %v178_v60, %v285_v61  ;;  %v294_v1 = vmul.f32 %v2485_v62, %v2369_v25  ;;  %v295_v2 = vmul.f32 %v2485_v62, %v2374_v29  ;;  %v291_v3 = vmul.f32 %v2485_v62, %v2353_v12 }
 0x11e   :  { %v292_v4 = vmul.f32 %v2485_v62, %v2359_v17  ;;  %v290_v5 = vmul.f32 %v2485_v62, %v2349_v10  ;;  %v296_v6 = vmul.f32 %v2485_v62, %v2379_v33  ;;  %v297_v8 = vmul.f32 %v2485_v62, %v2384_v37 }
 0x11f   :  { %v2487_v0 = vperm.slane %v286_v63, 0  ;;  %v293_v44 = vmul.f32 %v2485_v62, %v2364_v21  ;;  %v300_v49 = vmul.f32 %v2485_v62, %v2401_v50  ;;  %v301_v53 = vmul.f32 %v2485_v62, %v2421_v7 }
 0x120   :  { %v304_v61 = vmul.f32 %v2485_v62, %v2435_v28 }
 0x121   :  { %v313_v9 = vadd.f32 %v2487_v0, %v294_v1  ;;  %v314_v11 = vadd.f32 %v2487_v0, %v295_v2  ;;  %v310_v13 = vadd.f32 %v2487_v0, %v291_v3  ;;  %v311_v14 = vadd.f32 %v2487_v0, %v292_v4 }
 0x122   :  { %v309_v15 = vadd.f32 %v2487_v0, %v290_v5  ;;  %v315_v16 = vadd.f32 %v2487_v0, %v296_v6  ;;  %v316_v18 = vadd.f32 %v2487_v0, %v297_v8  ;;  %v312_v56 = vadd.f32 %v2487_v0, %v293_v44 }
 0x123   :  { %v329_v19 = vmax.f32 %v313_v9, 0.0  ;;  %v330_v20 = vmax.f32 %v314_v11, 0.0  ;;  %v326_v22 = vmax.f32 %v310_v13, 0.0  ;;  %v327_v24 = vmax.f32 %v311_v14, 0.0 }
 0x124   :  { %v325_v26 = vmax.f32 %v309_v15, 0.0  ;;  %v331_v32 = vmax.f32 %v315_v16, 0.0  ;;  %v332_v38 = vmax.f32 %v316_v18, 0.0  ;;  %v319_v57 = vadd.f32 %v2487_v0, %v300_v49 }
 0x125   :  { %v2510_v27 = vrot.slane %v329_v19, 7  ;;  %v2512_v30 = vrot.slane %v330_v20, 7  ;;  %v360_v31 = vrot.slane %v326_v22, 7  ;;  %v2514_v34 = vrot.slane %v327_v24, 7 }
 0x126   :  { %v359_v36 = vrot.slane %v325_v26, 7  ;;  %v2544_v52 = vrot.slane %v331_v32, 7  ;;  %v2549_v55 = vrot.slane %v332_v38, 7  ;;  %v320_v59 = vadd.f32 %v2487_v0, %v301_v53 }
 0x127   :  { %v2518_v39 = vsel %vm392_vm6, 0.0, %v2510_v27  ;;  %v2522_v40 = vsel %vm392_vm6, 0.0, %v2512_v30  ;;  %v2525_v43 = vsel %vm392_vm6, 0.0, %v360_v31  ;;  %v2533_v47 = vsel %vm392_vm6, 0.0, %v2514_v34 }
 0x128   :  { %3919 = vst [vmem:[#allocation13_spill] sm:$0xff] %v2525_v43  ;;  %v1955_v42 = vpack.i.bf16 %v2522_v40, %v2518_v39  ;;  %v2536_v48 = vsel %vm392_vm6, 0.0, %v359_v36  ;;  %v1940_v51 = vpack.i.bf16 %v2533_v47, %v2525_v43  ;;  %v328_v60 = vmax.f32 %v312_v56, 0.0 }
 0x129   :  { %3920 = vst [vmem:[#allocation14_spill] sm:$0xff] %v2536_v48  ;;  %v1935_v46 = vpack.i.bf16 %v2525_v43, %v2536_v48  ;;  %v2560_v63 = vsel %vm392_vm6, 0.0, %v2544_v52  ;;  %v335_v1 = vmax.f32 %v319_v57, 0.0  ;;  %v336_v2 = vmax.f32 %v320_v59, 0.0 }
 0x12a   :  { %1956 = vrot.lane.b32.xlu0 %v1955_v42, %s2238_s2  ;;  %1941 = vrot.lane.b32.xlu2 %v1940_v51, %s2239_s3  ;;  %v305_v3 = vmul.f32 %v2485_v62, %v2455_v58  ;;  %v2566_v4 = vsel %vm392_vm6, 0.0, %v2549_v55  ;;  %v362_v5 = vrot.slane %v328_v60, 7  ;;  %v298_v6 = vmul.f32 %v2485_v62, %v2389_v41 }
 0x12b   :  { %1936 = vrot.lane.b32.xlu1 %v1935_v46, %s2238_s2  ;;  %v299_v8 = vmul.f32 %v2485_v62, %v2394_v45  ;;  %v303_v9 = vmul.f32 %v2485_v62, %v2457_v54  ;;  %v2240_v11 = vmov 0.0   ;;  %v323_v14 = vadd.f32 %v2487_v0, %v304_v61 }
 0x12c   :  { %v358_v13 = vrot.slane %v2240_v11, 7  ;;  %v324_v15 = vadd.f32 %v2487_v0, %v305_v3  ;;  %v1960_v16 = vpack.i.bf16 %v2560_v63, %v2522_v40  ;;  %v2579_v18 = vsel %vm392_vm6, 0.0, %v362_v5 }
 0x12d   :  { %v317_v19 = vadd.f32 %v2487_v0, %v298_v6  ;;  %v318_v20 = vadd.f32 %v2487_v0, %v299_v8  ;;  %v1965_v22 = vpack.i.bf16 %v2566_v4, %v2560_v63  ;;  %v1945_v24 = vpack.i.bf16 %v2579_v18, %v2533_v47 }
 0x12e   :  { %v2587_v26 = vrot.slane %v335_v1, 7  ;;  %v2589_v32 = vrot.slane %v336_v2, 7  ;;  %v322_v38 = vadd.f32 %v2487_v0, %v303_v9  ;;  %v339_v44 = vmax.f32 %v323_v14, 0.0 }
 0x12f   :  { %v340_v42 = vmax.f32 %v324_v15, 0.0  ;;  %v2596_v49 = vsel %vm392_vm6, %v359_v36, 0.0  ;;  %v333_v51 = vmax.f32 %v317_v19, 0.0  ;;  %v334_v46 = vmax.f32 %v318_v20, 0.0 }
 0x130   :  { %v2600_v53 = vsel %vm392_vm6, 0.0, %v2587_v26  ;;  %v2604_v56 = vsel %vm392_vm6, 0.0, %v2589_v32  ;;  %v2607_v57 = vsel %vm392_vm6, 0.0, %v358_v13  ;;  %v338_v59 = vmax.f32 %v322_v38, 0.0 }
 0x131   :  { %3921 = vst [vmem:[#allocation15_spill] sm:$0xff] %v2604_v56  ;;  %v412_v60 = vsel %vm392_vm6, %v360_v31, 0.0  ;;  %v461_v36 = vrot.slane %v2536_v48, 1  ;;  %v2611_v61 = vrot.slane %v339_v44, 7  ;;  %v2613_v1 = vrot.slane %v340_v42, 7 }
 0x132   :  { %1961 = vrot.lane.b32.xlu0 %v1960_v16, %s2239_s3  ;;  %1966 = vrot.lane.b32.xlu2 %v1965_v22, %s2238_s2  ;;  %3922 = vst [vmem:[#allocation16_spill] sm:$0xff] %v2607_v57  ;;  %v462_v2 = vrot.slane %v2596_v49, 1  ;;  %v302_v3 = vmul.f32 %v2485_v62, %v2440_v35  ;;  %v1995_v6 = vpack.i.bf16 %v2604_v56, %v2600_v53  ;;  %v2622_v9 = vrot.slane %v333_v51, 7 }
 0x133   :  { %1946 = vrot.lane.b32.xlu1 %v1945_v24, %s2238_s2  ;;  %v1970_v8 = vpack.i.bf16 %v2607_v57, %v2566_v4  ;;  %v368_v31 = vrot.slane %v334_v46, 7  ;;  %v1950_v11 = vpack.i.bf16 %v2518_v39, %v2579_v18  ;;  %v464_v14 = vrot.slane %v2525_v43, 1 }
 0x134   :  { %v465_v15 = vrot.slane %v412_v60, 1  ;;  %v321_v16 = vadd.f32 %v2487_v0, %v302_v3  ;;  %v372_v19 = vrot.slane %v338_v59, 7  ;;  %v2633_v62 = vsel %vm392_vm6, 0.0, %v2611_v61 }
 0x135   :  { %v2637_v20 = vsel %vm392_vm6, 0.0, %v2613_v1  ;;  %v2640_v22 = vsel %vm457_vm7, %v461_v36, %v462_v2  ;;  %v2644_v0 = vsel %vm392_vm6, %v2514_v34, 0.0  ;;  %v2648_v24 = vsel %vm392_vm6, 0.0, %v2622_v9 }
 0x136   :  { %3923 = vst [vmem:[#allocation17_spill] sm:$0xff] %v2648_v24  ;;  %v2651_v38 = vsel %vm392_vm6, 0.0, %v368_v31  ;;  %v2654_v44 = vsel %vm392_vm6, %v362_v5, 0.0  ;;  %v2658_v42 = vsel %vm392_vm6, %v2510_v27, 0.0  ;;  %v2661_v51 = vsel %vm457_vm7, %v464_v14, %v465_v15 }
 0x137   :  { %3924 = vst [vmem:[#allocation18_spill] sm:$0xff] %v2658_v42  ;;  %v337_v46 = vmax.f32 %v321_v16, 0.0  ;;  %v555_v34 = vrot.slane %v2525_v43, 2  ;;  %v556_v59 = vrot.slane %v412_v60, 2  ;;  %v558_v36 = vrot.slane %v2533_v47, 2 }
 0x138   :  { %v559_v2 = vrot.slane %v2644_v0, 2  ;;  %v470_v3 = vrot.slane %v2579_v18, 1  ;;  %v471_v5 = vrot.slane %v2654_v44, 1  ;;  %v474_v27 = vrot.slane %v2658_v42, 1 }
 0x139   :  { %v2675_v60 = vsel %vm392_vm6, %v2512_v30, 0.0  ;;  %v1975_v14 = vpack.i.bf16 %v2651_v38, %v2648_v24  ;;  %v2020_v15 = vpack.i.bf16 %v2661_v51, %v2640_v22  ;;  %v371_v16 = vrot.slane %v337_v46, 7 }
 0x13a   :  { %1996 = vrot.lane.b32.xlu0 %v1995_v6, %s2238_s2  ;;  %1971 = vrot.lane.b32.xlu2 %v1970_v8, %s2239_s3  ;;  %v473_v6 = vrot.slane %v2518_v39, 1  ;;  %v410_v8 = vsel %vm392_vm6, %v358_v13, 0.0  ;;  %v2682_v43 = vsel %vm392_vm6, 0.0, %v372_v19  ;;  %v2686_v13 = vsel %vm548_vm8, %v555_v34, %v556_v59 }
 0x13b   :  { %1951 = vrot.lane.b32.xlu1 %v1950_v11, %s2239_s3  ;;  %v2000_v11 = vpack.i.bf16 %v2637_v20, %v2633_v62  ;;  %v2689_v23 = vsel %vm548_vm8, %v558_v36, %v559_v2  ;;  %v458_v30 = vrot.slane %v2607_v57, 1  ;;  %v459_v58 = vrot.slane %v410_v8, 1 }
 0x13c   :  { %v2695_v46 = vsel %vm457_vm7, %v470_v3, %v471_v5  ;;  %v2698_v28 = vsel %vm457_vm7, %v473_v6, %v474_v27  ;;  %v476_v34 = vrot.slane %v2522_v40, 1  ;;  %v477_v59 = vrot.slane %v2675_v60, 1 }
 0x13d   :  { %v2703_v36 = vsel %vm392_vm6, %v372_v19, 0.0  ;;  %v2706_v2 = vsel %vm392_vm6, 0.0, %v371_v16  ;;  %v1985_v3 = vpack.i.bf16 %v2600_v53, %v2651_v38  ;;  %v2718_v6 = vpack.i.bf16 %v2698_v28, %v2695_v46 }
 0x13e   :  { %v2721_v19 = vsel %vm457_vm7, %v458_v30, %v459_v58  ;;  %v549_v27 = vrot.slane %v2607_v57, 2  ;;  %v552_v54 = vrot.slane %v2536_v48, 2  ;;  %v553_v35 = vrot.slane %v2596_v49, 2 }
 0x13f   :  { %v2730_v7 = vsel %vm392_vm6, %v368_v31, 0.0  ;;  %v2005_v5 = vpack.i.bf16 %v2706_v2, %v2604_v56  ;;  %v2735_v50 = vsel %vm392_vm6, %v371_v16, 0.0  ;;  %v485_v58 = vrot.slane %v2651_v38, 1 }
 0x140   :  { %v1980_v30 = vpack.i.bf16 %v2682_v43, %v2706_v2  ;;  %v2745_v49 = vsel %vm392_vm6, %v2544_v52, 0.0  ;;  %v2749_v31 = vsel %vm392_vm6, %v2549_v55, 0.0  ;;  %v2763_v52 = vsel %vm548_vm8, %v552_v54, %v553_v35 }
 0x141   :  { %v692_v16 = vrot.slane %v2749_v31, 1  ;;  %v497_v54 = vrot.slane %v2682_v43, 1  ;;  %v422_v41 = vsel %vm392_vm6, %v2589_v32, 0.0  ;;  %v421_v32 = vsel %vm392_vm6, %v2587_v26, 0.0 }
 0x142   :  { %2001 = vrot.lane.b32.xlu0 %v2000_v11, %s2238_s2  ;;  %1976 = vrot.lane.b32.xlu2 %v1975_v14, %s2238_s2  ;;  %v2710_v11 = vpack.i.bf16 %v2689_v23, %v2686_v13  ;;  %v550_v14 = vrot.slane %v410_v8, 2  ;;  %v486_v8 = vrot.slane %v2730_v7, 1  ;;  %v586_v26 = vrot.slane %v2735_v50, 2 }
 0x143   :  { %2021 = vrot.lane.b32.xlu1 %v2020_v15, %s2241_s23  ;;  %v2725_v15 = vsel %vm457_vm7, %v476_v34, %v477_v59  ;;  %v2010_v34 = vpack.i.bf16 %v2640_v22, %v2721_v19  ;;  %v494_v22 = vrot.slane %v2706_v2, 1 }
 0x144   :  { %v2755_v59 = vsel %vm548_vm8, %v549_v27, %v550_v14  ;;  %v2766_v55 = vsel %vm457_vm7, %v485_v58, %v486_v8  ;;  %v419_v27 = vsel %vm392_vm6, %v2622_v9, 0.0  ;;  %v482_v14 = vrot.slane %v2648_v24, 1 }
 0x145   :  { %3925 = vst [vmem:[#allocation19_spill] sm:$0xff] %v2755_v59  ;;  %v483_v57 = vrot.slane %v419_v27, 1  ;;  %v498_v58 = vrot.slane %v2703_v36, 1  ;;  %v2015_v48 = vpack.i.bf16 %v2763_v52, %v2755_v59  ;;  %v489_v59 = vrot.slane %v421_v32, 1 }
 0x146   :  { %v574_v42 = vrot.slane %v419_v27, 2  ;;  %v425_v8 = vsel %vm392_vm6, %v2611_v61, 0.0 }
 0x147   :  { %v2782_v9 = vsel %vm457_vm7, %v482_v14, %v483_v57  ;;  %v492_v14 = vrot.slane %v422_v41, 1  ;;  %v583_v57 = vrot.slane %v422_v41, 2  ;;  %v577_v41 = vrot.slane %v2730_v7, 2 }
 0x14a   :  { %2006 = vrot.lane.b32.xlu0 %v2005_v5, %s2239_s3  ;;  %1981 = vrot.lane.b32.xlu2 %v1980_v30, %s2238_s2  ;;  %v495_v5 = vrot.slane %v2735_v50, 1  ;;  %v691_v30 = vrot.slane %v2566_v4, 1  ;;  %v3930_v50 = vrot.slane %v2560_v63, 1 }
 0x14b   :  { %2036 = vrot.lane.b32.xlu1 %v2710_v11, %s2242_s24 }
 0x14c   :  { %v2776_v35 = vsel %vm457_vm7, %v494_v22, %v495_v5  ;;  %v2785_v45 = vsel %vm457_vm7, %v691_v30, %v692_v16  ;;  %v2794_v5 = vsel %vm457_vm7, %v497_v54, %v498_v58  ;;  %v491_v16 = vrot.slane %v2604_v56, 1 }
 0x14d   :  { %v488_v30 = vrot.slane %v2600_v53, 1  ;;  %v573_v22 = vrot.slane %v2648_v24, 2  ;;  %v582_v58 = vrot.slane %v2604_v56, 2  ;;  %v576_v56 = vrot.slane %v2651_v38, 2 }
 0x14e   :  { %v2807_v54 = vsel %vm457_vm7, %v491_v16, %v492_v14  ;;  %v588_v16 = vrot.slane %v2682_v43, 2  ;;  %v591_v14 = vrot.slane %v2633_v62, 2  ;;  %v579_v24 = vrot.slane %v2600_v53, 2 }
 0x14f   :  { %v2818_v27 = vsel %vm457_vm7, %v488_v30, %v489_v59  ;;  %v2827_v61 = vsel %vm548_vm8, %v582_v58, %v583_v57  ;;  %v592_v59 = vrot.slane %v425_v8, 2  ;;  %v500_v30 = vrot.slane %v2633_v62, 1 }
 0x150   :  { %v585_v57 = vrot.slane %v2706_v2, 2  ;;  %v2853_v7 = vsel %vm548_vm8, %v576_v56, %v577_v41  ;;  %v3926_v41 = vpack.i.bf16 %v2633_v62, %v2682_v43 }
 0x152   :  { %2011 = vrot.lane.b32.xlu0 %v2010_v34, %s2243_s25  ;;  %1986 = vrot.lane.b32.xlu2 %v1985_v3, %s2239_s3  ;;  %v2821_v34 = vsel %vm548_vm8, %v573_v22, %v574_v42  ;;  %v589_v3 = vrot.slane %v2703_v36, 2  ;;  %v501_v42 = vrot.slane %v425_v8, 1  ;;  %v2841_v36 = vsel %vm548_vm8, %v591_v14, %v592_v59 }
 0x153   :  { %2071 = vrot.lane.b32.xlu1 %v2718_v6, %s2243_s25  ;;  %v2856_v14 = vsel %vm548_vm8, %v585_v57, %v586_v26  ;;  %v694_v26 = vrot.slane %v2637_v20, 1  ;;  %v562_v8 = vrot.slane %v2654_v44, 2  ;;  %v1599_v44 = vsel %vm1587_vm2, %v2379_v33, 0.0 }
 0x154   :  { %v2835_v22 = vsel %vm548_vm8, %v588_v16, %v589_v3  ;;  %v2844_v58 = vsel %vm457_vm7, %v500_v30, %v501_v42  ;;  %v580_v3 = vrot.slane %v421_v32, 2  ;;  %v426_v30 = vsel %vm392_vm6, %v2613_v1, 0.0 }
 0x155   :  { %v480_v42 = vrot.slane %v2745_v49, 1  ;;  %v3927_v1 = vpack.i.bf16 %v2725_v15, %v2698_v28  ;;  %v749_v32 = vrot.slane %v426_v30, 2 }
 0x156   :  { %v2867_v56 = vsel %vm548_vm8, %v579_v24, %v580_v3  ;;  %v695_v24 = vrot.slane %v426_v30, 1  ;;  %v1593_v3 = vsel %vm1587_vm2, %v2364_v21, 0.0  ;;  %v561_v30 = vrot.slane %v2579_v18, 2 }
 0x157   :  { %v2904_v16 = vsel %vm457_vm7, %v3930_v50, %v480_v42  ;;  %v567_v50 = vrot.slane %v2522_v40, 2  ;;  %v568_v42 = vrot.slane %v2675_v60, 2 }
 0x158   :  { %v2897_v57 = vsel %vm457_vm7, %v694_v26, %v695_v24  ;;  %v2025_v24 = vpack.i.bf16 %v2686_v13, %v2763_v52  ;;  %v1588_v13 = vsel %vm1587_vm2, %v2349_v10, 0.0 }
 0x159   :  { %v569_v52 = vsel %vm548_vm8, %v567_v50, %v568_v42  ;;  %v745_v50 = vrot.slane %v2566_v4, 2  ;;  %v746_v42 = vrot.slane %v2749_v31, 2  ;;  %v1601_v31 = vsel %vm1587_vm2, %v2384_v37, 0.0 }
 0x15a   :  { %2016 = vrot.lane.b32.xlu0 %v2015_v48, %s2244_s26  ;;  %1991 = vrot.lane.b32.xlu2 %v3926_v41, %s2239_s3  ;;  %v748_v41 = vrot.slane %v2637_v20, 2  ;;  %v3929_v48 = vrot.slane %v2533_v47, 1 }
 0x15b   :  { %2081 = vrot.lane.b32.xlu1 %v3927_v1, %s2241_s23  ;;  %v3928_v1 = vrot.slane %v2644_v0, 1 }
 0x15c   :  { %v2909_v0 = vsel %vm548_vm8, %v748_v41, %v749_v32  ;;  %v570_v32 = vrot.slane %v2560_v63, 2  ;;  %v571_v41 = vrot.slane %v2745_v49, 2 }
 0x15d   :  { %v469_v59 = vsel %vm457_vm7, %v3929_v48, %v3928_v1  ;;  %v2918_v1 = vpack.i.bf16 %v2904_v16, %v2725_v15  ;;  %v1591_v15 = vsel %vm1587_vm2, %v2359_v17, 0.0 }
 0x15e   :  { %v2030_v26 = vpack.i.bf16 %v469_v59, %v2661_v51  ;;  %v1589_v51 = vsel %vm1587_vm2, %v2353_v12, 0.0  ;;  %v572_v49 = vsel %vm548_vm8, %v570_v32, %v571_v41  ;;  %v1597_v32 = vsel %vm1587_vm2, %v2374_v29, 0.0 }
 0x15f   :  { %v1590_v60 = vadd.f32 %v1589_v51, %v1588_v13  ;;  %v2940_v28 = vpack.i.bf16 %v572_v49, %v569_v52 }
 0x161   :  { %v1592_v48 = vadd.f32 %v1591_v15, %v1590_v60  ;;  %v564_v15 = vrot.slane %v2518_v39, 2 }
 0x162   :  { %2031 = vrot.lane.b32.xlu0 %v2030_v26, %s2245_s27  ;;  %2026 = vrot.lane.b32.xlu2 %v2025_v24, %s2246_s28  ;;  %v1595_v24 = vsel %vm1587_vm2, %v2369_v25, 0.0 }
 0x163   :  { %2091 = vrot.lane.b32.xlu1 %v2918_v1, %s2245_s27  ;;  %v1594_v10 = vadd.f32 %v1593_v3, %v1592_v48  ;;  %v563_v3 = vsel %vm548_vm8, %v561_v30, %v562_v8  ;;  %v3933_v30 = vld [vmem:[#allocation5_spill] sm:$0xff] }
 0x164   :  { %v2055_v51 = vpack.i.bf16 %v563_v3, %v2689_v23  ;;  %v1605_v23 = vsel %vm1587_vm2, %v3933_v30, 0.0 }
 0x165   :  { %v1596_v41 = vadd.f32 %v1595_v24, %v1594_v10  ;;  %v3931_v10 = vld [vmem:[#allocation18_spill] sm:$0xff]  ;;  %v3932_v24 = vld [vmem:[#allocation4_spill] sm:$0xff] }
 0x166   :  { %v565_v60 = vrot.slane %v3931_v10, 2  ;;  %v1603_v33 = vsel %vm1587_vm2, %v3932_v24, 0.0 }
 0x167   :  { %v1598_v48 = vadd.f32 %v1597_v32, %v1596_v41  ;;  %v3935_v32 = vld [vmem:[#allocation7_spill] sm:$0xff] }
 0x168   :  { %v1609_v41 = vsel %vm1587_vm2, %v3935_v32, 0.0 }
 0x169   :  { %v1600_v4 = vadd.f32 %v1599_v44, %v1598_v48 }
 0x16a   :  { %2046 = vrot.lane.b32.xlu0 %v2710_v11, %s2244_s26  ;;  %2041 = vrot.lane.b32.xlu2 %v2030_v26, %s2243_s25  ;;  %v747_v11 = vsel %vm548_vm8, %v745_v50, %v746_v42  ;;  %v2050_v26 = vpack.i.bf16 %v2695_v46, %v469_v59  ;;  %v566_v46 = vsel %vm548_vm8, %v564_v15, %v565_v60  ;;  %v3934_v59 = vld [vmem:[#allocation6_spill] sm:$0xff] }
 0x16b   :  { %2106 = vrot.lane.b32.xlu1 %v2940_v28, %s2244_s26  ;;  %v2115_v13 = vpack.i.bf16 %v747_v11, %v572_v49  ;;  %v1602_v8 = vadd.f32 %v1601_v31, %v1600_v4  ;;  %v1607_v49 = vsel %vm1587_vm2, %v3934_v59, 0.0  ;;  %v2065_v44 = vpack.i.bf16 %v566_v46, %v563_v3  ;;  %v3936_v4 = vld [vmem:[#allocation19_spill] sm:$0xff] }
 0x16c   :  { %v2125_v31 = vpack.i.bf16 %v3936_v4, %v747_v11  ;;  %v2140_v3 = vpack.i.bf16 %v2766_v55, %v2776_v35  ;;  %v3939_v11 = vld [vmem:[#allocation8_spill] sm:$0xff] }
 0x16d   :  { %v1604_v50 = vadd.f32 %v1603_v33, %v1602_v8  ;;  %v3938_v33 = vld [vmem:[#allocation11_spill] sm:$0xff]  ;;  %v1615_v8 = vsel %vm1587_vm2, %v3939_v11, 0.0 }
 0x16e   :  { %v1613_v15 = vsel %vm1587_vm2, %v3938_v33, 0.0 }
 0x16f   :  { %v1606_v42 = vadd.f32 %v1605_v23, %v1604_v50  ;;  %v3940_v50 = vld [vmem:[#allocation10_spill] sm:$0xff] }
 0x171   :  { %v1608_v48 = vadd.f32 %v1607_v49, %v1606_v42  ;;  %v1617_v49 = vsel %vm1587_vm2, %v3940_v50, 0.0 }
 0x172   :  { %2056 = vrot.lane.b32.xlu0 %v2055_v51, %s2246_s28  ;;  %2051 = vrot.lane.b32.xlu2 %v2050_v26, %s2241_s23  ;;  %v3937_v51 = vld [vmem:[#allocation9_spill] sm:$0xff] }
 0x173   :  { %2116 = vrot.lane.b32.xlu1 %v2115_v13, %s2246_s28  ;;  %v1611_v26 = vsel %vm1587_vm2, %v3937_v51, 0.0  ;;  %v1610_v13 = vadd.f32 %v1609_v41, %v1608_v48  ;;  %v2110_v41 = vpack.i.bf16 %v2785_v45, %v2904_v16  ;;  %v2085_v48 = vpack.i.bf16 %v569_v52, %v566_v46 }
 0x174   :  { %v3943_v16 = vpack.i.bf16 %v2721_v19, %v2785_v45  ;;  %v3945_v45 = vpack.i.bf16 %v2827_v61, %v2821_v34  ;;  %v3946_v19 = vpack.i.bf16 %v2807_v54, %v2782_v9  ;;  %vm1016_vm2 = vcmask 195584  }
 0x175   :  { %v1612_v10 = vadd.f32 %v1611_v26, %v1610_v13  ;;  %v3942_v26 = vld [vmem:[#allocation12_spill] sm:$0xff] }
 0x176   :  { %v1657_v13 = vrot.slane %v3942_v26, 4 }
 0x177   :  { %v1614_v60 = vadd.f32 %v1613_v15, %v1612_v10  ;;  %v3944_v15 = vpack.i.bf16 %v2794_v5, %v2776_v35 }
 0x178   :  { %v1658_v46 = vadd.f32 %v1657_v13, %v3942_v26 }
 0x179   :  { %v1616_v23 = vadd.f32 %v1615_v8, %v1614_v60 }
 0x17a   :  { %2066 = vrot.lane.b32.xlu0 %v2065_v44, %s2242_s24  ;;  %2061 = vrot.lane.b32.xlu2 %v2718_v6, %s2245_s27 }
 0x17b   :  { %2126 = vrot.lane.b32.xlu1 %v2125_v31, %s2242_s24  ;;  %v1618_v42 = vadd.f32 %v1617_v49, %v1616_v23 }
 0x17d   :  { %v1619_v4 = vrot.slane %v1618_v42, 4 }
 0x17f   :  { %v1620_v31 = vadd.f32 %v1619_v4, %v1618_v42 }
 0x181   :  { %v1621_v52 = vrot.slane %v1620_v31, 2 }
 0x182   :  { %2101 = vrot.lane.b32.xlu0 %v2918_v1, %s2243_s25  ;;  %2076 = vrot.lane.b32.xlu2 %v2065_v44, %s2244_s26  ;;  %v3941_v1 = vpack.i.bf16 %v2766_v55, %v2782_v9  ;;  %v3949_v9 = vpack.i.bf16 %v2844_v58, %v2794_v5 }
 0x183   :  { %2141 = vrot.lane.b32.xlu1 %v2140_v3, %s2243_s25  ;;  %v1622_v60 = vadd.f32 %v1621_v52, %v1620_v31  ;;  %v1659_v3 = vrot.slane %v1658_v46, 2 }
 0x184   :  { %v2992_v6 = vpop.permute.xlu2 %1941 }
 0x185   :  { %v1623_v8 = vrot.slane %v1622_v60, 1  ;;  %v1660_v23 = vadd.f32 %v1659_v3, %v1658_v46  ;;  %v3951_v3 = vpack.i.bf16 %v2835_v22, %v2867_v56 }
 0x187   :  { %v1661_v4 = vrot.slane %v1660_v23, 1 }
 0x189   :  { %v1662_v26 = vadd.f32 %v1661_v4, %v1660_v23 }
 0x18a   :  { %2111 = vrot.lane.b32.xlu0 %v2110_v41, %s2241_s23  ;;  %2086 = vrot.lane.b32.xlu2 %v2085_v48, %s2246_s28  ;;  %v1624_v48 = vadd.f32 %v1623_v8, %v1622_v60  ;;  %v3950_v60 = vpack.i.bf16 %v2853_v7, %v2821_v34  ;;  %v1071_v34 = vld [vmem:[%s3873_s4 + $0x10] sm:$0x3] }
 0x18b   :  { %2151 = vrot.lane.b32.xlu1 %v3941_v1, %s2241_s23  ;;  %v2145_v1 = vpack.i.bf16 %v2853_v7, %v2856_v14  ;;  %v1663_v46 = vmul.f32 0.0078125, %v1662_v26  ;;  %v1089_v4 = vunpack.c.l.b16 %v1071_v34  ;;  %v3956_v34 = vpack.i.bf16 %v2827_v61, %v2867_v56 }
 0x18c   :  { %v3004_v44 = vpop.permute.xlu2 %1966  ;;  %v3049_v31 = vmul.f32 0.0078125, %v1624_v48  ;;  %v3952_v48 = vpack.i.bf16 %v2835_v22, %v2856_v14 }
 0x192   :  { %2121 = vrot.lane.b32.xlu0 %v3943_v16, %s2245_s27  ;;  %2096 = vrot.lane.b32.xlu2 %v2940_v28, %s2242_s24  ;;  %v3947_v28 = vpack.i.bf16 %v2818_v27, %v2766_v55  ;;  %v3948_v55 = vpack.i.bf16 %v2841_v36, %v2835_v22 }
 0x193   :  { %2161 = vrot.lane.b32.xlu1 %v3944_v15, %s2241_s23  ;;  %v1664_v15 = vmul.f32 %v3049_v31, %v3049_v31 }
 0x194   :  { %v3018_v10 = vpop.permute.xlu2 %1971 }
 0x19a   :  { %2136 = vrot.lane.b32.xlu0 %v3945_v45, %s2244_s26  ;;  %2131 = vrot.lane.b32.xlu2 %v3946_v19, %s2243_s25  ;;  %v1665_v45 = vsub.f32 %v1663_v46, %v1664_v15  ;;  %v1919_v15 = vld [vmem:[%s3873_s4 + $0x8] sm:$0xff] }
 0x19b   :  { %2171 = vrot.lane.b32.xlu1 %v3947_v28, %s2245_s27 }
 0x19c   :  { %v3032_v49 = vpop.permute.xlu0 %1956  ;;  %v3034_v42 = vpop.permute.xlu2 %1976  ;;  %v3075_v23 = vadd.f32 1e-05, %v1665_v45  ;;  %v3955_v45 = vpack.i.bf16 %v2897_v57, %v2844_v58 }
 0x19d   :  { %v3036_v41 = vpop.permute.xlu1 %1936 }
 0x19e   :  { %2232 = vrsqrt.f32 %v3075_v23  ;;  %vm1673_vm13 = vweird.f32 %v3075_v23 }
 0x1a2   :  { %2146 = vrot.lane.b32.xlu0 %v2145_v1, %s2244_s26  ;;  %2186 = vrot.lane.b32.xlu2 %v3948_v55, %s2242_s24  ;;  %v3953_v1 = vpack.i.bf16 %v2807_v54, %v2818_v27 }
 0x1a3   :  { %2181 = vrot.lane.b32.xlu1 %v3949_v9, %s2245_s27  ;;  %v1092_v9 = vpack.c.b16 %v1089_v4, %v1089_v4 }
 0x1a4   :  { %v3051_v13 = vpop.permute.xlu0 %1961  ;;  %v3053_v16 = vpop.permute.xlu2 %1981 }
 0x1a5   :  { %v3055_v52 = vpop.permute.xlu1 %1946  ;;  %v1121_v22 = vsel %vm124_vm0, %v1092_v9, 0 }
 0x1a6   :  { %1128 = vmatpush.bf16.msra.mxu1 %v1121_v22  ;;  %1921 = vmatpush.bf16.msrb.mxu3 %v1121_v22  ;;  %v3958_v22 = vpack.i.bf16 %v2776_v35, %v2807_v54  ;;  %v3960_v35 = vpack.i.bf16 %v2856_v14, %v2827_v61  ;;  %v3962_v61 = vld [vmem:[#allocation16_spill] sm:$0xff] }
 0x1aa   :  { %2156 = vrot.lane.b32.xlu0 %v3950_v60, %s2246_s28  ;;  %531 = vrot.lane.b32.xlu2 %v2844_v58, %s2243_s25  ;;  %v2233_v60 = vpop.eup %2232 }
 0x1ab   :  { %2196 = vrot.lane.b32.xlu1 %v3951_v3, %s2244_s26  ;;  %v3954_v3 = vpack.i.bf16 %v2867_v56, %v2853_v7  ;;  %v1668_v4 = vmul.f32 %v2233_v60, %v3075_v23  ;;  %1129 = vmatpush.bf16.msra.mxu1 %v1919_v15  ;;  %v1918_v7 = vld [vmem:[%s3873_s4] sm:$0xff]  ;;  %v3957_v56 = vpack.i.bf16 %v2794_v5, %v2818_v27  ;;  %vm1674_vm10 = vweird.f32 %v2233_v60  ;;  %s2247_s4 = smov 124  }
 0x1ac   :  { %v3069_v19 = vpop.permute.xlu0 %1996  ;;  %v3071_v28 = vpop.permute.xlu2 %1986  ;;  %1922 = vmatpush.bf16.msrb.mxu3 %v1919_v15  ;;  %v3959_v15 = vpack.i.bf16 %v2909_v0, %v2841_v36  ;;  %vm1675_vm15 = vmor %vm1673_vm13, %vm1674_vm10 }
 0x1ad   :  { %v3073_v8 = vpop.permute.xlu1 %1951  ;;  %v1669_v58 = vmul.f32 %v2233_v60, %v1668_v4 }
 0x1af   :  { %1130 = vmatpush.bf16.msra.mxu1 %v1918_v7 }
 0x1b0   :  { %1923 = vmatpush.bf16.msrb.mxu3 %v1918_v7 }
 0x1b2   :  { %2166 = vrot.lane.b32.xlu0 %v3952_v48, %s2246_s28  ;;  %2201 = vrot.lane.b32.xlu2 %v3953_v1, %s2241_s23 }
 0x1b3   :  { %622 = vrot.lane.b32.xlu1 %v2841_v36, %s2244_s26  ;;  %v1939_v36 = vunpack.i.h.bf16 %v3036_v41 }
 0x1b4   :  { %v3091_v55 = vpop.permute.xlu0 %2001  ;;  %v3093_v26 = vpop.permute.xlu2 %1991 }
 0x1b5   :  { %v2022_v46 = vpop.permute.xlu1 %2021 }
 0x1ba   :  { %2176 = vrot.lane.b32.xlu0 %v3954_v3, %s2242_s24  ;;  %2211 = vrot.lane.b32.xlu2 %v3955_v45, %s2241_s23  ;;  %v1670_v45 = vmul.f32 0.5, %v1669_v58 }
 0x1bb   :  { %2206 = vrot.lane.b32.xlu1 %v3956_v34, %s2246_s28 }
 0x1bc   :  { %v3111_v48 = vpop.permute.xlu0 %2006  ;;  %v2027_v1 = vpop.permute.xlu2 %2026  ;;  %v1671_v7 = vsub.f32 1.5, %v1670_v45  ;;  %v2024_v45 = vunpack.i.h.bf16 %v2022_v46 }
 0x1bd   :  { %v3117_v9 = vpop.permute.xlu1 %2036 }
 0x1be   :  { %v1672_v27 = vmul.f32 %v2233_v60, %v1671_v7  ;;  %v2023_v7 = vunpack.i.l.bf16 %v2022_v46 }
 0x1c0   :  { %v1676_v46 = vsel %vm1675_vm15, %v2233_v60, %v1672_v27 }
 0x1c2   :  { %2191 = vrot.lane.b32.xlu0 %v3957_v56, %s2243_s25  ;;  %2221 = vrot.lane.b32.xlu2 %v3958_v22, %s2245_s27 }
 0x1c3   :  { %2216 = vrot.lane.b32.xlu1 %v3959_v15, %s2246_s28  ;;  %v3961_v15 = vld [vmem:[#allocation14_spill] sm:$0xff] }
 0x1c4   :  { %v2012_v3 = vpop.permute.xlu0 %2011  ;;  %v3131_v34 = vpop.permute.xlu2 %2041 }
 0x1c5   :  { %v3133_v4 = vpop.permute.xlu1 %2071  ;;  %v2014_v50 = vunpack.i.h.bf16 %v2012_v3  ;;  %v2013_v5 = vunpack.i.l.bf16 %v2012_v3 }
 0x1c7   :  { %v935_v3 = vsel %vm99_vm1, %v3961_v15, %v2014_v50  ;;  %v934_v14 = vsel %vm99_vm1, %v3962_v61, %v2013_v5 }
 0x1ca   :  { %827 = vrot.lane.b32.xlu0 %v2637_v20, %s2239_s3  ;;  %872 = vrot.lane.b32.xlu2 %v2897_v57, %s2245_s27  ;;  %v1938_v57 = vunpack.i.l.bf16 %v3036_v41  ;;  %v2029_v41 = vunpack.i.h.bf16 %v2027_v1 }
 0x1cb   :  { %2226 = vrot.lane.b32.xlu1 %v3960_v35, %s2242_s24 }
 0x1cc   :  { %v2017_v54 = vpop.permute.xlu0 %2016  ;;  %v3144_v58 = vpop.permute.xlu2 %2051 }
 0x1cd   :  { %v3146_v56 = vpop.permute.xlu1 %2081  ;;  %v2019_v20 = vunpack.i.h.bf16 %v2017_v54  ;;  %v2018_v22 = vunpack.i.l.bf16 %v2017_v54  ;;  %v2028_v54 = vunpack.i.l.bf16 %v2027_v1  ;;  %v1944_v1 = vunpack.i.h.bf16 %v2992_v6 }
 0x1cf   :  { %v950_v35 = vsel %vm949_vm9, %v934_v14, %v2018_v22  ;;  %v951_v51 = vsel %vm949_vm9, %v935_v3, %v2019_v20  ;;  %v2039_v20 = vunpack.i.h.bf16 %v3117_v9  ;;  %v2038_v22 = vunpack.i.l.bf16 %v3117_v9 }
 0x1d0   :  { %v966_v33 = vsel %vm965_vm11, %v950_v35, %v1938_v57  ;;  %v967_v11 = vsel %vm965_vm11, %v951_v51, %v1939_v36  ;;  %v2043_v9 = vunpack.i.l.bf16 %v3131_v34 }
 0x1d1   :  { %v983_v50 = vsel %vm982_vm12, %v966_v33, %v2023_v7  ;;  %v984_v5 = vsel %vm982_vm12, %v967_v11, %v2024_v45  ;;  %v1943_v33 = vunpack.i.l.bf16 %v2992_v6  ;;  %v2044_v7 = vunpack.i.h.bf16 %v3131_v34 }
 0x1d2   :  { %917 = vrot.lane.b32.xlu0 %v2909_v0, %s2242_s24  ;;  %v1000_v51 = vsel %vm999_vm14, %v983_v50, %v2028_v54  ;;  %v1001_v23 = vsel %vm999_vm14, %v984_v5, %v2029_v41  ;;  %v2074_v41 = vunpack.i.h.bf16 %v3133_v4  ;;  %v2073_v54 = vunpack.i.l.bf16 %v3133_v4 }
 0x1d3   :  { %1678 = vrot.lane.b32.xlu1 %v1676_v46, %s2247_s4  ;;  %v1017_v57 = vsel %vm1016_vm2, %v1000_v51, %v1943_v33  ;;  %v1018_v15 = vsel %vm1016_vm2, %v1001_v23, %v1944_v1  ;;  %v1978_v5 = vunpack.i.l.bf16 %v3034_v42  ;;  %v937_v34 = vsel %vm99_vm1, %v2533_v47, %v2044_v7 }
 0x1d4   :  { %v2032_v11 = vpop.permute.xlu0 %2031  ;;  %v3168_v36 = vpop.permute.xlu2 %2061  ;;  %v939_v4 = vsel %vm99_vm1, %v2518_v39, %v2074_v41  ;;  %v1958_v47 = vunpack.i.l.bf16 %v3032_v49  ;;  %v2054_v39 = vunpack.i.h.bf16 %v3144_v58 }
 0x1d5   :  { %v3170_v60 = vpop.permute.xlu1 %2091  ;;  %v2034_v27 = vunpack.i.h.bf16 %v2032_v11  ;;  %v2033_v0 = vunpack.i.l.bf16 %v2032_v11 }
 0x1d7   :  { %v1034_v3 = vsel %vm1033_vm3, %v1017_v57, %v2033_v0  ;;  %v1035_v6 = vsel %vm1033_vm3, %v1018_v15, %v2034_v27  ;;  %v3189_v27 = vsel %vm965_vm11, %v950_v35, %v1978_v5  ;;  %v3963_v0 = vld [vmem:[#allocation13_spill] sm:$0xff] }
 0x1d8   :  { %v1051_v61 = vsel %vm1050_vm4, %v1034_v3, %v2038_v22  ;;  %v1052_v14 = vsel %vm1050_vm4, %v1035_v6, %v2039_v20  ;;  %v936_v20 = vsel %vm99_vm1, %v3963_v0, %v2043_v9  ;;  %v938_v22 = vsel %vm99_vm1, %v2579_v18, %v2073_v54 }
 0x1d9   :  { %v1072_v45 = vpack.c.bf16 %v1052_v14, %v1051_v61  ;;  %v1959_v6 = vunpack.i.h.bf16 %v3032_v49  ;;  %v1949_v61 = vunpack.i.h.bf16 %v3055_v52  ;;  %v1948_v14 = vunpack.i.l.bf16 %v3055_v52 }
 0x1da   :  { %v2053_v18 = vunpack.i.l.bf16 %v3144_v58  ;;  %v2083_v49 = vunpack.i.l.bf16 %v3146_v56  ;;  %v1964_v58 = vunpack.i.h.bf16 %v3051_v13 }
 0x1db   :  { %1894 = vmatmul.msk.bf16.vlgmr.msra.gmra.mxu1 %vm1095_vm5, %v1072_v45 }
 0x1dc   :  { %v2047_v50 = vpop.permute.xlu0 %2046  ;;  %v2077_v46 = vpop.permute.xlu2 %2076 }
 0x1dd   :  { %v3186_v51 = vpop.permute.xlu1 %2106  ;;  %v2049_v23 = vunpack.i.h.bf16 %v2047_v50  ;;  %v2048_v1 = vunpack.i.l.bf16 %v2047_v50  ;;  %v2079_v33 = vunpack.i.h.bf16 %v2077_v46  ;;  %v2078_v11 = vunpack.i.l.bf16 %v2077_v46 }
 0x1de   :  { %v2084_v50 = vunpack.i.h.bf16 %v3146_v56 }
 0x1df   :  { %v954_v57 = vsel %vm949_vm9, %v938_v22, %v2078_v11  ;;  %v955_v15 = vsel %vm949_vm9, %v939_v4, %v2079_v33  ;;  %v953_v3 = vsel %vm949_vm9, %v937_v34, %v2049_v23  ;;  %v952_v35 = vsel %vm949_vm9, %v936_v20, %v2048_v1 }
 0x1e0   :  { %v970_v45 = vsel %vm965_vm11, %v954_v57, %v1958_v47  ;;  %v971_v7 = vsel %vm965_vm11, %v955_v15, %v1959_v6  ;;  %v969_v9 = vsel %vm965_vm11, %v953_v3, %v1949_v61  ;;  %v968_v41 = vsel %vm965_vm11, %v952_v35, %v1948_v14 }
 0x1e1   :  { %v1963_v1 = vunpack.i.l.bf16 %v3051_v13  ;;  %v987_v34 = vsel %vm982_vm12, %v970_v45, %v2083_v49  ;;  %v988_v0 = vsel %vm982_vm12, %v971_v7, %v2084_v50  ;;  %v985_v20 = vsel %vm982_vm12, %v968_v41, %v2053_v18 }
 0x1e2   :  { %v986_v4 = vsel %vm982_vm12, %v969_v9, %v2054_v39  ;;  %v1954_v13 = vunpack.i.h.bf16 %v3073_v8  ;;  %v1953_v3 = vunpack.i.l.bf16 %v3073_v8  ;;  %v2064_v14 = vunpack.i.h.bf16 %v3168_v36 }
 0x1e3   :  { %v2063_v39 = vunpack.i.l.bf16 %v3168_v36  ;;  %v2094_v45 = vunpack.i.h.bf16 %v3170_v60  ;;  %v2093_v7 = vunpack.i.l.bf16 %v3170_v60 }
 0x1e4   :  { %v2057_v54 = vpop.permute.xlu0 %2056  ;;  %v2087_v5 = vpop.permute.xlu2 %2086 }
 0x1e5   :  { %v3215_v46 = vpop.permute.xlu1 %2116  ;;  %v2059_v52 = vunpack.i.h.bf16 %v2057_v54  ;;  %v2058_v23 = vunpack.i.l.bf16 %v2057_v54  ;;  %v2089_v33 = vunpack.i.h.bf16 %v2087_v5  ;;  %v2088_v11 = vunpack.i.l.bf16 %v2087_v5 }
 0x1e7   :  { %v1004_v56 = vsel %vm999_vm14, %v987_v34, %v2088_v11  ;;  %v1005_v22 = vsel %vm999_vm14, %v988_v0, %v2089_v33  ;;  %v1002_v57 = vsel %vm999_vm14, %v985_v20, %v2058_v23  ;;  %v1003_v15 = vsel %vm999_vm14, %v986_v4, %v2059_v52 }
 0x1e8   :  { %v1021_v35 = vsel %vm1016_vm2, %v1004_v56, %v1963_v1  ;;  %v1022_v6 = vsel %vm1016_vm2, %v1005_v22, %v1964_v58  ;;  %v1019_v47 = vsel %vm1016_vm2, %v1002_v57, %v1953_v3  ;;  %v1020_v61 = vsel %vm1016_vm2, %v1003_v15, %v1954_v13 }
 0x1e9   :  { %v1036_v5 = vsel %vm1033_vm3, %v1019_v47, %v2063_v39  ;;  %v1037_v52 = vsel %vm1033_vm3, %v1020_v61, %v2064_v14  ;;  %v1038_v58 = vsel %vm1033_vm3, %v1021_v35, %v2093_v7  ;;  %v1039_v1 = vsel %vm1033_vm3, %v1022_v6, %v2094_v45 }
 0x1ea   :  { %v2109_v15 = vunpack.i.h.bf16 %v3186_v51  ;;  %v2108_v13 = vunpack.i.l.bf16 %v3186_v51  ;;  %v1969_v6 = vunpack.i.h.bf16 %v3004_v44  ;;  %v1968_v47 = vunpack.i.l.bf16 %v3004_v44 }
 0x1eb   :  { %v1974_v7 = vunpack.i.h.bf16 %v3018_v10 }
 0x1ec   :  { %v2067_v18 = vpop.permute.xlu0 %2066  ;;  %v2097_v9 = vpop.permute.xlu2 %2096 }
 0x1ed   :  { %v3237_v41 = vpop.permute.xlu1 %2126  ;;  %v2069_v8 = vunpack.i.h.bf16 %v2067_v18  ;;  %v2068_v54 = vunpack.i.l.bf16 %v2067_v18  ;;  %v2099_v50 = vunpack.i.h.bf16 %v2097_v9  ;;  %v2098_v49 = vunpack.i.l.bf16 %v2097_v9 }
 0x1ee   :  { %v1973_v9 = vunpack.i.l.bf16 %v3018_v10 }
 0x1ef   :  { %v1053_v23 = vsel %vm1050_vm4, %v1036_v5, %v2068_v54  ;;  %v1054_v36 = vsel %vm1050_vm4, %v1037_v52, %v2069_v8  ;;  %v1055_v33 = vsel %vm1050_vm4, %v1038_v58, %v2098_v49  ;;  %v1056_v11 = vsel %vm1050_vm4, %v1039_v1, %v2099_v50 }
 0x1f0   :  { %v1073_v60 = vpack.c.bf16 %v1054_v36, %v1053_v23  ;;  %v1074_v34 = vpack.c.bf16 %v1056_v11, %v1055_v33  ;;  %v2129_v58 = vunpack.i.h.bf16 %v3237_v41  ;;  %v2128_v1 = vunpack.i.l.bf16 %v3237_v41 }
 0x1f2   :  { %1895 = vmatmul.msk.bf16.gmra.mxu1 %vm1095_vm5, %v1073_v60 }
 0x1f4   :  { %v2102_v0 = vpop.permute.xlu0 %2101  ;;  %v2132_v60 = vpop.permute.xlu2 %2131 }
 0x1f5   :  { %v3248_v20 = vpop.permute.xlu1 %2141  ;;  %v2104_v4 = vunpack.i.h.bf16 %v2102_v0  ;;  %v2103_v56 = vunpack.i.l.bf16 %v2102_v0 }
 0x1f7   :  { %v941_v22 = vsel %vm99_vm1, %v2560_v63, %v2104_v4  ;;  %v940_v57 = vsel %vm99_vm1, %v2522_v40, %v2103_v56  ;;  %v2119_v63 = vunpack.i.h.bf16 %v3215_v46  ;;  %v2118_v40 = vunpack.i.l.bf16 %v3215_v46 }
 0x1f8   :  { %v957_v3 = vsel %vm949_vm9, %v941_v22, %v2109_v15  ;;  %v956_v35 = vsel %vm949_vm9, %v940_v57, %v2108_v13  ;;  %v2144_v15 = vunpack.i.h.bf16 %v3248_v20  ;;  %v2133_v13 = vunpack.i.l.bf16 %v2132_v60 }
 0x1f9   :  { %v972_v45 = vsel %vm965_vm11, %v956_v35, %v1968_v47  ;;  %v973_v51 = vsel %vm965_vm11, %v957_v3, %v1969_v6 }
 0x1fc   :  { %v2112_v61 = vpop.permute.xlu0 %2111  ;;  %v3293_v57 = vpop.permute.xlu2 %2186 }
 0x1fd   :  { %v2152_v14 = vpop.permute.xlu1 %2151  ;;  %v2114_v39 = vunpack.i.h.bf16 %v2112_v61  ;;  %v2113_v18 = vunpack.i.l.bf16 %v2112_v61  ;;  %v1998_v61 = vunpack.i.l.bf16 %v3069_v19 }
 0x1ff   :  { %v989_v8 = vsel %vm982_vm12, %v972_v45, %v2113_v18  ;;  %v990_v44 = vsel %vm982_vm12, %v973_v51, %v2114_v39  ;;  %v943_v39 = vsel %vm99_vm1, %v2651_v38, %v2144_v15  ;;  %v3964_v18 = vld [vmem:[#allocation17_spill] sm:$0xff] }
 0x200   :  { %v1006_v54 = vsel %vm999_vm14, %v989_v8, %v2118_v40  ;;  %v1007_v50 = vsel %vm999_vm14, %v990_v44, %v2119_v63  ;;  %v942_v63 = vsel %vm99_vm1, %v3964_v18, %v2133_v13  ;;  %v2153_v8 = vunpack.i.l.bf16 %v2152_v14 }
 0x201   :  { %v1023_v49 = vsel %vm1016_vm2, %v1006_v54, %v1973_v9  ;;  %v1024_v46 = vsel %vm1016_vm2, %v1007_v50, %v1974_v7  ;;  %v1979_v9 = vunpack.i.h.bf16 %v3034_v42  ;;  %v2134_v54 = vunpack.i.h.bf16 %v2132_v60 }
 0x202   :  { %1896 = vmatmul.msk.bf16.gmra.mxu1 %vm1095_vm5, %v1074_v34  ;;  %v2143_v50 = vunpack.i.l.bf16 %v3248_v20  ;;  %v1988_v42 = vunpack.i.l.bf16 %v3071_v28  ;;  %v3965_v20 = vld [vmem:[#allocation15_spill] sm:$0xff] }
 0x203   :  { %v945_v15 = vsel %vm99_vm1, %v3965_v20, %v2134_v54 }
 0x204   :  { %v3275_v5 = vpop.permute.xlu0 %2121  ;;  %v3308_v44 = vpop.permute.xlu2 %531 }
 0x205   :  { %v3277_v52 = vpop.permute.xlu1 %2161  ;;  %v2124_v23 = vunpack.i.h.bf16 %v3275_v5  ;;  %v2123_v36 = vunpack.i.l.bf16 %v3275_v5 }
 0x206   :  { %v2164_v18 = vunpack.i.h.bf16 %v3277_v52 }
 0x207   :  { %v1040_v33 = vsel %vm1033_vm3, %v1023_v49, %v2123_v36  ;;  %v1041_v11 = vsel %vm1033_vm3, %v1024_v46, %v2124_v23  ;;  %v2154_v49 = vunpack.i.h.bf16 %v2152_v14  ;;  %v946_v14 = vsel %vm99_vm1, %v2706_v2, %v2143_v50 }
 0x208   :  { %v1057_v34 = vsel %vm1050_vm4, %v1040_v33, %v2128_v1  ;;  %v1058_v0 = vsel %vm1050_vm4, %v1041_v11, %v2129_v58  ;;  %v1994_v50 = vunpack.i.h.bf16 %v3093_v26 }
 0x209   :  { %v1075_v4 = vpack.c.bf16 %v1058_v0, %v1057_v34  ;;  %v1989_v0 = vunpack.i.h.bf16 %v3071_v28 }
 0x20c   :  { %v2137_v56 = vpop.permute.xlu0 %2136 }
 0x20d   :  { %v3291_v22 = vpop.permute.xlu1 %2171  ;;  %v2138_v3 = vunpack.i.l.bf16 %v2137_v56  ;;  %v2139_v46 = vunpack.i.h.bf16 %v2137_v56 }
 0x20f   :  { %v958_v45 = vsel %vm949_vm9, %v942_v63, %v2138_v3  ;;  %v961_v3 = vsel %vm949_vm9, %v945_v15, %v2139_v46  ;;  %v2163_v63 = vunpack.i.l.bf16 %v3277_v52  ;;  %v2174_v15 = vunpack.i.h.bf16 %v3291_v22 }
 0x210   :  { %v975_v38 = vsel %vm965_vm11, %v958_v45, %v1979_v9 }
 0x211   :  { %v992_v60 = vsel %vm982_vm12, %v975_v38, %v2154_v49  ;;  %v1993_v38 = vunpack.i.l.bf16 %v3093_v26 }
 0x212   :  { %1897 = vmatmul.msk.bf16.gmra.mxu1 %vm1095_vm5, %v1075_v4  ;;  %v991_v4 = vsel %vm982_vm12, %v3189_v27, %v2153_v8 }
 0x214   :  { %v2147_v35 = vpop.permute.xlu0 %2146 }
 0x215   :  { %v2182_v6 = vpop.permute.xlu1 %2181  ;;  %v2149_v47 = vunpack.i.h.bf16 %v2147_v35  ;;  %v2148_v36 = vunpack.i.l.bf16 %v2147_v35 }
 0x216   :  { %v2184_v46 = vunpack.i.h.bf16 %v2182_v6 }
 0x217   :  { %v959_v40 = vsel %vm949_vm9, %v943_v39, %v2149_v47  ;;  %v962_v35 = vsel %vm949_vm9, %v946_v14, %v2148_v36  ;;  %v1984_v47 = vunpack.i.h.bf16 %v3053_v16  ;;  %v2183_v36 = vunpack.i.l.bf16 %v2182_v6 }
 0x218   :  { %v3305_v51 = vsel %vm965_vm11, %v959_v40, %v1998_v61  ;;  %v1983_v61 = vunpack.i.l.bf16 %v3053_v16  ;;  %v3335_v40 = vpop.permute.xlu2 %2201  ;;  %v2173_v14 = vunpack.i.l.bf16 %v3291_v22 }
 0x219   :  { %v979_v2 = vsel %vm965_vm11, %v962_v35, %v1984_v47 }
 0x21a   :  { %v978_v39 = vsel %vm965_vm11, %v961_v3, %v1983_v61  ;;  %v996_v49 = vsel %vm982_vm12, %v979_v2, %v2164_v18  ;;  %v2008_v18 = vunpack.i.l.bf16 %v3111_v48 }
 0x21b   :  { %v995_v16 = vsel %vm982_vm12, %v978_v39, %v2163_v63 }
 0x21c   :  { %v2157_v1 = vpop.permute.xlu0 %2156 }
 0x21d   :  { %v3312_v33 = vpop.permute.xlu1 %2196  ;;  %v2159_v11 = vunpack.i.h.bf16 %v2157_v1  ;;  %v2158_v34 = vunpack.i.l.bf16 %v2157_v1 }
 0x21f   :  { %v1008_v56 = vsel %vm999_vm14, %v991_v4, %v2158_v34  ;;  %v1009_v13 = vsel %vm999_vm14, %v992_v60, %v2159_v11  ;;  %v2189_v11 = vunpack.i.h.bf16 %v3293_v57  ;;  %v2188_v34 = vunpack.i.l.bf16 %v3293_v57 }
 0x220   :  { %v1025_v28 = vsel %vm1016_vm2, %v1008_v56, %v1988_v42  ;;  %v1026_v27 = vsel %vm1016_vm2, %v1009_v13, %v1989_v0  ;;  %v2203_v57 = vunpack.i.l.bf16 %v3335_v40  ;;  %v2212_v47 = vpop.permute.xlu2 %2211 }
 0x221   :  { %v1042_v39 = vsel %vm1033_vm3, %v1025_v28, %v2173_v14  ;;  %v1043_v2 = vsel %vm1033_vm3, %v1026_v27, %v2174_v15  ;;  %v2009_v15 = vunpack.i.h.bf16 %v3111_v48 }
 0x222   :  { %v993_v63 = vsel %vm982_vm12, %v3305_v51, %v2203_v57 }
 0x224   :  { %v2167_v45 = vpop.permute.xlu0 %2166 }
 0x225   :  { %v623_v9 = vpop.permute.xlu1 %622  ;;  %v2169_v8 = vunpack.i.h.bf16 %v2167_v45  ;;  %v2168_v54 = vunpack.i.l.bf16 %v2167_v45 }
 0x227   :  { %v1012_v1 = vsel %vm999_vm14, %v995_v16, %v2168_v54  ;;  %v1013_v52 = vsel %vm999_vm14, %v996_v49, %v2169_v8  ;;  %v948_v8 = vsel %vm99_vm1, %v2633_v62, %v3308_v44  ;;  %v1999_v49 = vunpack.i.h.bf16 %v3069_v19 }
 0x228   :  { %v1029_v0 = vsel %vm1016_vm2, %v1012_v1, %v1993_v38  ;;  %v1030_v42 = vsel %vm1016_vm2, %v1013_v52, %v1994_v50  ;;  %v964_v28 = vsel %vm949_vm9, %v948_v8, %v623_v9  ;;  %v2004_v38 = vunpack.i.h.bf16 %v3091_v55 }
 0x229   :  { %v1046_v26 = vsel %vm1033_vm3, %v1029_v0, %v2183_v36  ;;  %v1047_v4 = vsel %vm1033_vm3, %v1030_v42, %v2184_v46  ;;  %v2214_v46 = vunpack.i.h.bf16 %v2212_v47  ;;  %v2003_v44 = vunpack.i.l.bf16 %v3091_v55 }
 0x22a   :  { %v1063_v60 = vsel %vm1050_vm4, %v1046_v26, %v2188_v34  ;;  %v1064_v6 = vsel %vm1050_vm4, %v1047_v4, %v2189_v11  ;;  %v981_v51 = vsel %vm965_vm11, %v964_v28, %v2004_v38  ;;  %v2199_v52 = vunpack.i.h.bf16 %v3312_v33  ;;  %v2222_v4 = vpop.permute.xlu2 %2221 }
 0x22b   :  { %v1078_v20 = vpack.c.bf16 %v1064_v6, %v1063_v60  ;;  %v2198_v9 = vunpack.i.l.bf16 %v3312_v33  ;;  %v2204_v34 = vunpack.i.h.bf16 %v3335_v40  ;;  %v998_v0 = vsel %vm982_vm12, %v981_v51, %v2214_v46 }
 0x22c   :  { %v2177_v56 = vpop.permute.xlu0 %2176  ;;  %v2213_v26 = vunpack.i.l.bf16 %v2212_v47  ;;  %v2224_v14 = vunpack.i.h.bf16 %v2222_v4  ;;  %v2223_v47 = vunpack.i.l.bf16 %v2222_v4 }
 0x22d   :  { %v2207_v13 = vpop.permute.xlu1 %2206  ;;  %v2179_v3 = vunpack.i.h.bf16 %v2177_v56  ;;  %v2178_v35 = vunpack.i.l.bf16 %v2177_v56  ;;  %1900 = vmatmul.msk.bf16.vlgmr.msrb.gmra.mxu3 %vm1095_vm5, %v1078_v20 }
 0x22e   :  { %v2208_v61 = vunpack.i.l.bf16 %v2207_v13  ;;  %v2209_v33 = vunpack.i.h.bf16 %v2207_v13 }
 0x22f   :  { %v1059_v22 = vsel %vm1050_vm4, %v1042_v39, %v2178_v35  ;;  %v1060_v45 = vsel %vm1050_vm4, %v1043_v2, %v2179_v3 }
 0x230   :  { %v1010_v54 = vsel %vm999_vm14, %v993_v63, %v2208_v61  ;;  %v1076_v50 = vpack.c.bf16 %v1060_v45, %v1059_v22 }
 0x231   :  { %v1027_v27 = vsel %vm1016_vm2, %v1010_v54, %v2008_v18 }
 0x232   :  { %1898 = vmatmul.msk.bf16.gmra.mxu1 %vm1095_vm5, %v1076_v50  ;;  %v1044_v48 = vsel %vm1033_vm3, %v1027_v27, %v2223_v47  ;;  %v873_v54 = vpop.permute.xlu2 %872  ;;  %v1585_v50 = vld [vmem:[%s3874_s10] sm:$0x1] }
 0x234   :  { %v2192_v16 = vpop.permute.xlu0 %2191 }
 0x235   :  { %v2217_v36 = vpop.permute.xlu1 %2216  ;;  %v2194_v1 = vunpack.i.h.bf16 %v2192_v16  ;;  %v2193_v62 = vunpack.i.l.bf16 %v2192_v16 }
 0x236   :  { %v2219_v11 = vunpack.i.h.bf16 %v2217_v36  ;;  %v2218_v3 = vunpack.i.l.bf16 %v2217_v36 }
 0x237   :  { %v947_v42 = vsel %vm99_vm1, %v2682_v43, %v2194_v1  ;;  %v944_v19 = vsel %vm99_vm1, %v2600_v53, %v2193_v62 }
 0x238   :  { %v1015_v60 = vsel %vm999_vm14, %v998_v0, %v2219_v11  ;;  %v963_v55 = vsel %vm949_vm9, %v947_v42, %v2199_v52  ;;  %v960_v6 = vsel %vm949_vm9, %v944_v19, %v2198_v9 }
 0x239   :  { %v977_v20 = vsel %vm965_vm11, %v960_v6, %v1999_v49  ;;  %v980_v40 = vsel %vm965_vm11, %v963_v55, %v2003_v44  ;;  %v1032_v43 = vsel %vm1016_vm2, %v1015_v60, %v1974_v7 }
 0x23a   :  { %v994_v53 = vsel %vm982_vm12, %v977_v20, %v2204_v34  ;;  %v997_v56 = vsel %vm982_vm12, %v980_v40, %v2213_v26  ;;  %v1049_v8 = vsel %vm1033_vm3, %v1032_v43, %v2124_v23 }
 0x23b   :  { %v1011_v57 = vsel %vm999_vm14, %v994_v53, %v2209_v33  ;;  %v1014_v7 = vsel %vm999_vm14, %v997_v56, %v2218_v3  ;;  %v1066_v16 = vsel %vm1050_vm4, %v1049_v8, %v2129_v58 }
 0x23c   :  { %v828_v35 = vpop.permute.xlu0 %827  ;;  %v1028_v13 = vsel %vm1016_vm2, %v1011_v57, %v2009_v15 }
 0x23d   :  { %v2227_v61 = vpop.permute.xlu1 %2226  ;;  %v1045_v39 = vsel %vm1033_vm3, %v1028_v13, %v2224_v14  ;;  %v1031_v22 = vsel %vm1016_vm2, %v1014_v7, %v828_v35 }
 0x23e   :  { %v2229_v10 = vunpack.i.h.bf16 %v2227_v61  ;;  %v2228_v2 = vunpack.i.l.bf16 %v2227_v61  ;;  %v1048_v27 = vsel %vm1033_vm3, %v1031_v22, %v873_v54 }
 0x240   :  { %v1061_v18 = vsel %vm1050_vm4, %v1044_v48, %v2228_v2  ;;  %v1062_v63 = vsel %vm1050_vm4, %v1045_v39, %v2229_v10 }
 0x241   :  { %v1077_v45 = vpack.c.bf16 %v1062_v63, %v1061_v18 }
 0x243   :  { %1899 = vmatmul.msk.bf16.gmra.mxu1 %vm1095_vm5, %v1077_v45 }
 0x244   :  { %v918_v28 = vpop.permute.xlu0 %917 }
 0x245   :  { %v1679_v38 = vpop.permute.xlu1 %1678  ;;  %v1065_v51 = vsel %vm1050_vm4, %v1048_v27, %v918_v28 }
 0x246   :  { %v1681_v5 = vmul.f32 %v1679_v38, %v1585_v50  ;;  %v1079_v49 = vpack.c.bf16 %v1066_v16, %v1065_v51 }
 0x248   :  { %v1683_v23 = vperm.slane %v1681_v5, 0  ;;  %1901 = vmatmul.msk.bf16.gmra.mxu3 %vm1095_vm5, %v1079_v49 }
 0x24a   :  { %1684 = vrot.lane.b32.xlu2 %v1683_v23, %s2243_s25 }
 0x258   :  { %v3414_v46 = vpop.f32.mrf.mxu1 }
 0x259   :  { %v1212_v42 = vmul.f32 %v3414_v46, %v3414_v46 }
 0x25b   :  { %v1228_v33 = vsel %vm99_vm1, %v1212_v42, 0.0 }
 0x260   :  { %v3416_v36 = vpop.f32.mrf.mxu1 }
 0x261   :  { %v1213_v0 = vmul.f32 %v3416_v36, %v3416_v36  ;;  %v1175_v19 = vsel %vm99_vm1, %v3416_v36, 0.0 }
 0x263   :  { %v1229_v4 = vsel %vm99_vm1, %v1213_v0, 0.0 }
 0x264   :  { %v1230_v53 = vadd.f32 %v1229_v4, %v1228_v33 }
 0x26f   :  { %v3418_v1 = vpop.f32.mrf.mxu1 }
 0x270   :  { %v1214_v26 = vmul.f32 %v3418_v1, %v3418_v1  ;;  %v1177_v60 = vsel %vm99_vm1, %v3418_v1, 0.0 }
 0x272   :  { %v1231_v20 = vsel %vm99_vm1, %v1214_v26, 0.0 }
 0x273   :  { %v1232_v13 = vadd.f32 %v1231_v20, %v1230_v53 }
 0x277   :  { %v3420_v62 = vpop.f32.mrf.mxu1 }
 0x278   :  { %v1215_v55 = vmul.f32 %v3420_v62, %v3420_v62  ;;  %v1179_v40 = vsel %vm99_vm1, %v3420_v62, 0.0 }
 0x27a   :  { %v1233_v56 = vsel %vm99_vm1, %v1215_v55, 0.0 }
 0x27b   :  { %v1234_v2 = vadd.f32 %v1233_v56, %v1232_v13 }
 0x27f   :  { %v3422_v44 = vpop.f32.mrf.mxu1 }
 0x280   :  { %v1216_v43 = vmul.f32 %v3422_v44, %v3422_v44  ;;  %v1181_v57 = vsel %vm99_vm1, %v3422_v44, 0.0 }
 0x282   :  { %v1235_v61 = vsel %vm99_vm1, %v1216_v43, 0.0 }
 0x283   :  { %v1236_v22 = vadd.f32 %v1235_v61, %v1234_v2 }
 0x287   :  { %v3424_v41 = vpop.f32.mrf.mxu1 }
 0x288   :  { %v1217_v3 = vmul.f32 %v3424_v41, %v3424_v41  ;;  %v1183_v39 = vsel %vm99_vm1, %v3424_v41, 0.0 }
 0x28a   :  { %v1237_v48 = vsel %vm99_vm1, %v1217_v3, 0.0 }
 0x28b   :  { %v1238_v28 = vadd.f32 %v1237_v48, %v1236_v22 }
 0x28f   :  { %v3426_v58 = vpop.f32.mrf.mxu1 }
 0x290   :  { %v1218_v10 = vmul.f32 %v3426_v58, %v3426_v58  ;;  %v1185_v18 = vsel %vm99_vm1, %v3426_v58, 0.0 }
 0x292   :  { %v1239_v8 = vsel %vm99_vm1, %v1218_v10, 0.0 }
 0x293   :  { %v1240_v49 = vadd.f32 %v1239_v8, %v1238_v28 }
 0x297   :  { %v3432_v11 = vpop.f32.mrf.mxu1 }
 0x298   :  { %v1219_v63 = vmul.f32 %v3432_v11, %v3432_v11  ;;  %v1187_v54 = vsel %vm99_vm1, %v3432_v11, 0.0 }
 0x29a   :  { %v1241_v51 = vsel %vm99_vm1, %v1219_v63, 0.0 }
 0x29b   :  { %v1242_v26 = vadd.f32 %v1241_v51, %v1240_v49 }
 0x2a4   :  { %v3428_v52 = vpop.permute.xlu2 %1684 }
 0x2a5   :  { %v1687_v9 = vmul.f32 %v3428_v52, %v3049_v31  ;;  %v1174_v31 = vsel %vm99_vm1, %v3414_v46, 0.0 }
 0x2a6   :  { %v1176_v6 = vadd.f32 %v1175_v19, %v1174_v31 }
 0x2a7   :  { %1689 = vrot.lane.b32.xlu0 %v1687_v9, %s2247_s4 }
 0x2a8   :  { %v1178_v14 = vadd.f32 %v1177_v60, %v1176_v6 }
 0x2aa   :  { %v1180_v47 = vadd.f32 %v1179_v40, %v1178_v14 }
 0x2ac   :  { %v1182_v7 = vadd.f32 %v1181_v57, %v1180_v47 }
 0x2ae   :  { %v1184_v45 = vadd.f32 %v1183_v39, %v1182_v7 }
 0x2af   :  { %v3435_v34 = vpop.f32.mrf.mxu1 }
 0x2b0   :  { %v3465_v35 = vpop.f32.mrf.mxu3  ;;  %v1220_v50 = vmul.f32 %v3435_v34, %v3435_v34  ;;  %v1186_v27 = vadd.f32 %v1185_v18, %v1184_v45  ;;  %v1189_v16 = vsel %vm99_vm1, %v3435_v34, 0.0 }
 0x2b1   :  { %v1224_v53 = vmul.f32 %v3465_v35, %v3465_v35  ;;  %v1197_v13 = vsel %vm99_vm1, %v3465_v35, 0.0 }
 0x2b2   :  { %v1188_v23 = vadd.f32 %v1187_v54, %v1186_v27  ;;  %v1243_v9 = vsel %vm99_vm1, %v1220_v50, 0.0 }
 0x2b3   :  { %v1244_v55 = vadd.f32 %v1243_v9, %v1242_v26  ;;  %v1251_v7 = vsel %vm99_vm1, %v1224_v53, 0.0 }
 0x2b4   :  { %v1190_v31 = vadd.f32 %v1189_v16, %v1188_v23 }
 0x2b7   :  { %v3458_v15 = vpop.f32.mrf.mxu1 }
 0x2b8   :  { %v1221_v5 = vmul.f32 %v3458_v15, %v3458_v15  ;;  %v1191_v0 = vsel %vm99_vm1, %v3458_v15, 0.0  ;;  %v3492_v42 = vpop.f32.mrf.mxu3 }
 0x2b9   :  { %v1192_v6 = vadd.f32 %v1191_v0, %v1190_v31  ;;  %v1225_v39 = vmul.f32 %v3492_v42, %v3492_v42  ;;  %v1199_v48 = vsel %vm99_vm1, %v3492_v42, 0.0 }
 0x2ba   :  { %v1245_v4 = vsel %vm99_vm1, %v1221_v5, 0.0 }
 0x2bb   :  { %v1246_v20 = vadd.f32 %v1245_v4, %v1244_v55  ;;  %v1253_v22 = vsel %vm99_vm1, %v1225_v39, 0.0 }
 0x2c0   :  { %v3482_v38 = vpop.f32.mrf.mxu1 }
 0x2c1   :  { %v1222_v19 = vmul.f32 %v3482_v38, %v3482_v38  ;;  %v1193_v60 = vsel %vm99_vm1, %v3482_v38, 0.0 }
 0x2c2   :  { %v1194_v40 = vadd.f32 %v1193_v60, %v1192_v6 }
 0x2c3   :  { %v1247_v33 = vsel %vm99_vm1, %v1222_v19, 0.0 }
 0x2c4   :  { %v1248_v57 = vadd.f32 %v1247_v33, %v1246_v20 }
 0x2c8   :  { %v3500_v43 = vpop.f32.mrf.mxu1 }
 0x2c9   :  { %v1195_v14 = vsel %vm99_vm1, %v3500_v43, 0.0  ;;  %v1223_v56 = vmul.f32 %v3500_v43, %v3500_v43 }
 0x2ca   :  { %v1196_v3 = vadd.f32 %v1195_v14, %v1194_v40 }
 0x2cb   :  { %v1249_v47 = vsel %vm99_vm1, %v1223_v56, 0.0  ;;  %v1167_v61 = vpop.f32.mrf.mxu3 }
 0x2cc   :  { %v1198_v10 = vadd.f32 %v1197_v13, %v1196_v3  ;;  %v1250_v2 = vadd.f32 %v1249_v47, %v1248_v57  ;;  %v1226_v45 = vmul.f32 %v1167_v61, %v1167_v61  ;;  %v1201_v54 = vsel %vm99_vm1, %v1167_v61, 0.0  ;;  %v1336_v47 = vld [vmem:[%s3875_s7] sm:$0x3] }
 0x2cd   :  { %v1370_v39 = vsel %vm124_vm0, %v1336_v47, 0 }
 0x2ce   :  { %v1252_v18 = vadd.f32 %v1251_v7, %v1250_v2  ;;  %v1200_v63 = vadd.f32 %v1199_v48, %v1198_v10  ;;  %v1255_v27 = vsel %vm99_vm1, %v1226_v45, 0.0  ;;  %1379 = vmatpush.bf16.msra.mxu2 %v1370_v39  ;;  %1924 = vmatpush.bf16.msra.mxu3 %v1370_v39 }
 0x2d0   :  { %v1254_v8 = vadd.f32 %v1253_v22, %v1252_v18  ;;  %v1202_v50 = vadd.f32 %v1201_v54, %v1200_v63  ;;  %v1172_v63 = vld [vmem:[%s3876_s5] sm:$0x1] }
 0x2d1   :  { %v1173_v54 = vld [vmem:[%s3877_s6] sm:$0x1] }
 0x2d2   :  { %v1256_v5 = vadd.f32 %v1255_v27, %v1254_v8 }
 0x2d3   :  { %v1169_v28 = vpop.f32.mrf.mxu3 }
 0x2d4   :  { %v1203_v51 = vsel %vm99_vm1, %v1169_v28, 0.0  ;;  %v1227_v16 = vmul.f32 %v1169_v28, %v1169_v28 }
 0x2d5   :  { %v1204_v49 = vadd.f32 %v1203_v51, %v1202_v50 }
 0x2d6   :  { %v1257_v23 = vsel %vm99_vm1, %v1227_v16, 0.0 }
 0x2d7   :  { %v1205_v9 = vrot.slane %v1204_v49, 4  ;;  %v1258_v0 = vadd.f32 %v1257_v23, %v1256_v5 }
 0x2d9   :  { %v1206_v19 = vadd.f32 %v1205_v9, %v1204_v49  ;;  %v1259_v26 = vrot.slane %v1258_v0, 4 }
 0x2db   :  { %v1207_v31 = vrot.slane %v1206_v19, 2  ;;  %v1260_v4 = vadd.f32 %v1259_v26, %v1258_v0 }
 0x2dd   :  { %v1208_v60 = vadd.f32 %v1207_v31, %v1206_v19  ;;  %v1261_v55 = vrot.slane %v1260_v4, 2 }
 0x2df   :  { %v1209_v6 = vrot.slane %v1208_v60, 1  ;;  %v1262_v33 = vadd.f32 %v1261_v55, %v1260_v4 }
 0x2e1   :  { %v1210_v20 = vadd.f32 %v1209_v6, %v1208_v60  ;;  %v1263_v40 = vrot.slane %v1262_v33, 1 }
 0x2e3   :  { %v1211_v53 = vmul.f32 0.0078125, %v1210_v20  ;;  %v1264_v14 = vadd.f32 %v1263_v40, %v1262_v33 }
 0x2e5   :  { %v1265_v56 = vmul.f32 0.0078125, %v1264_v14  ;;  %v1266_v57 = vmul.f32 %v1211_v53, %v1211_v53  ;;  %v1586_v14 = vld [vmem:[%s3878_s11] sm:$0x1] }
 0x2e7   :  { %v1267_v3 = vsub.f32 %v1265_v56, %v1266_v57 }
 0x2e9   :  { %v1268_v13 = vadd.f32 1e-05, %v1267_v3 }
 0x2eb   :  { %2234 = vrsqrt.f32 %v1268_v13  ;;  %vm1275_vm7 = vweird.f32 %v1268_v13 }
 0x2f1   :  { %v2235_v10 = vpop.eup %2234 }
 0x2f2   :  { %v1270_v2 = vmul.f32 %v2235_v10, %v1268_v13  ;;  %vm1276_vm6 = vweird.f32 %v2235_v10 }
 0x2f3   :  { %vm1277_vm8 = vmor %vm1275_vm7, %vm1276_vm6 }
 0x2f4   :  { %v1271_v7 = vmul.f32 %v2235_v10, %v1270_v2 }
 0x2f6   :  { %v1272_v48 = vmul.f32 0.5, %v1271_v7 }
 0x2f8   :  { %v1273_v18 = vsub.f32 1.5, %v1272_v48 }
 0x2fa   :  { %v1274_v22 = vmul.f32 %v2235_v10, %v1273_v18 }
 0x2fc   :  { %v1278_v45 = vsel %vm1277_vm8, %v2235_v10, %v1274_v22 }
 0x2fd   :  { %v1279_v8 = vmul.f32 %v1278_v45, %v1172_v63 }
 0x2ff   :  { %v1280_v50 = vmul.f32 %v1279_v8, %v1211_v53  ;;  %v3531_v27 = vperm.slane %v1279_v8, 0 }
 0x301   :  { %v1281_v51 = vsub.f32 %v1173_v54, %v1280_v50  ;;  %v1299_v16 = vmul.f32 %v3531_v27, %v1167_v61  ;;  %v1300_v5 = vmul.f32 %v3531_v27, %v1169_v28  ;;  %v1285_v23 = vmul.f32 %v3531_v27, %v3414_v46 }
 0x302   :  { %v1286_v9 = vmul.f32 %v3531_v27, %v3416_v36  ;;  %v1287_v46 = vmul.f32 %v3531_v27, %v3418_v1  ;;  %v1288_v36 = vmul.f32 %v3531_v27, %v3420_v62  ;;  %v1293_v13 = vmul.f32 %v3531_v27, %v3435_v34 }
 0x303   :  { %v1302_v49 = vperm.slane %v1281_v51, 0  ;;  %v1294_v1 = vmul.f32 %v3531_v27, %v3458_v15  ;;  %v1289_v10 = vmul.f32 %v3531_v27, %v3422_v44  ;;  %v1290_v2 = vmul.f32 %v3531_v27, %v3424_v41 }
 0x304   :  { %v1295_v15 = vmul.f32 %v3531_v27, %v3482_v38  ;;  %v1296_v54 = vmul.f32 %v3531_v27, %v3500_v43  ;;  %v1291_v41 = vmul.f32 %v3531_v27, %v3426_v58  ;;  %v1292_v51 = vmul.f32 %v3531_v27, %v3432_v11 }
 0x305   :  { %v1318_v0 = vadd.f32 %v1302_v49, %v1299_v16  ;;  %v1319_v19 = vadd.f32 %v1302_v49, %v1300_v5  ;;  %v1304_v26 = vadd.f32 %v1302_v49, %v1285_v23  ;;  %v1305_v31 = vadd.f32 %v1302_v49, %v1286_v9 }
 0x306   :  { %v1306_v61 = vadd.f32 %v1302_v49, %v1287_v46  ;;  %v1307_v28 = vadd.f32 %v1302_v49, %v1288_v36  ;;  %v1312_v47 = vadd.f32 %v1302_v49, %v1293_v13  ;;  %v1313_v39 = vadd.f32 %v1302_v49, %v1294_v1 }
 0x307   :  { %v1334_v4 = vmax.f32 %v1318_v0, 0.0  ;;  %v1335_v60 = vmax.f32 %v1319_v19, 0.0  ;;  %v1320_v55 = vmax.f32 %v1304_v26, 0.0  ;;  %v1321_v6 = vmax.f32 %v1305_v31, 0.0 }
 0x308   :  { %v1322_v40 = vmax.f32 %v1306_v61, 0.0  ;;  %v1323_v53 = vmax.f32 %v1307_v28, 0.0  ;;  %v1328_v7 = vmax.f32 %v1312_v47, 0.0  ;;  %v1329_v48 = vmax.f32 %v1313_v39, 0.0 }
 0x309   :  { %v1344_v33 = vpack.c.bf16 %v1335_v60, %v1334_v4  ;;  %v1337_v20 = vpack.c.bf16 %v1321_v6, %v1320_v55  ;;  %v1308_v18 = vadd.f32 %v1302_v49, %v1289_v10  ;;  %v1309_v63 = vadd.f32 %v1302_v49, %v1290_v2 }
 0x30a   :  { %v1338_v57 = vpack.c.bf16 %v1323_v53, %v1322_v40  ;;  %v1341_v22 = vpack.c.bf16 %v1329_v48, %v1328_v7  ;;  %v1314_v44 = vadd.f32 %v1302_v49, %v1295_v15  ;;  %v1315_v50 = vadd.f32 %v1302_v49, %v1296_v54  ;;  %v3968_v48 = vld [vmem:[#allocation8_spill] sm:$0xff]  ;;  %v3971_v15 = vld [vmem:[#allocation10_spill] sm:$0xff] }
 0x30b   :  { %1902 = vmatmul.msk.bf16.vlgmr.msra.gmra.mxu2 %vm99_vm1, %v1337_v20  ;;  %1909 = vmatmul.msk.bf16.vlgmr.msra.gmra.mxu3 %vm99_vm1, %v1344_v33  ;;  %v1324_v34 = vmax.f32 %v1308_v18, 0.0  ;;  %v1325_v45 = vmax.f32 %v1309_v63, 0.0  ;;  %v1310_v23 = vadd.f32 %v1302_v49, %v1291_v41  ;;  %v1311_v9 = vadd.f32 %v1302_v49, %v1292_v51  ;;  %v3966_v33 = vld [vmem:[#allocation2_spill] sm:$0xff]  ;;  %v3969_v18 = vld [vmem:[#allocation11_spill] sm:$0xff]  ;;  %v3970_v63 = vld [vmem:[#allocation9_spill] sm:$0xff] }
 0x30c   :  { %v1330_v16 = vmax.f32 %v1314_v44, 0.0  ;;  %v1331_v5 = vmax.f32 %v1315_v50, 0.0  ;;  %v1297_v38 = vmul.f32 %v3531_v27, %v3465_v35  ;;  %v1298_v43 = vmul.f32 %v3531_v27, %v3492_v42 }
 0x30d   :  { %v1339_v8 = vpack.c.bf16 %v1325_v45, %v1324_v34  ;;  %v1326_v19 = vmax.f32 %v1310_v23, 0.0  ;;  %v1327_v26 = vmax.f32 %v1311_v9, 0.0  ;;  %v1695_v35 = vmul.f32 %v3428_v52, %v2359_v17 }
 0x30e   :  { %v1342_v0 = vpack.c.bf16 %v1331_v5, %v1330_v16  ;;  %v1316_v58 = vadd.f32 %v1302_v49, %v1297_v38  ;;  %v1317_v4 = vadd.f32 %v1302_v49, %v1298_v43  ;;  %v1694_v42 = vmul.f32 %v3428_v52, %v2353_v12 }
 0x30f   :  { %v1340_v31 = vpack.c.bf16 %v1327_v26, %v1326_v19  ;;  %v1693_v49 = vmul.f32 %v3428_v52, %v3966_v33  ;;  %v1698_v17 = vmul.f32 %v3428_v52, %v2374_v29  ;;  %v1697_v12 = vmul.f32 %v3428_v52, %v2369_v25 }
 0x310   :  { %v1332_v60 = vmax.f32 %v1316_v58, 0.0  ;;  %v1333_v11 = vmax.f32 %v1317_v4, 0.0  ;;  %v1696_v28 = vmul.f32 %v3428_v52, %v2364_v21  ;;  %v1701_v29 = vmul.f32 %v3428_v52, %v3932_v24 }
 0x311   :  { %v1700_v25 = vmul.f32 %v3428_v52, %v2384_v37  ;;  %v1704_v24 = vmul.f32 %v3428_v52, %v3935_v32  ;;  %v1703_v37 = vmul.f32 %v3428_v52, %v3934_v59  ;;  %v1702_v47 = vmul.f32 %v3428_v52, %v3933_v30 }
 0x312   :  { %v1343_v55 = vpack.c.bf16 %v1333_v11, %v1332_v60  ;;  %v1707_v32 = vmul.f32 %v3428_v52, %v3968_v48  ;;  %v1706_v59 = vmul.f32 %v3428_v52, %v3969_v18  ;;  %v1705_v30 = vmul.f32 %v3428_v52, %v3970_v63 }
 0x313   :  { %v1708_v54 = vmul.f32 %v3428_v52, %v3971_v15 }
 0x319   :  { %v1690_v56 = vpop.permute.xlu0 %1689 }
 0x31a   :  { %v1692_v3 = vsub.f32 %v1586_v14, %v1690_v56 }
 0x31b   :  { %1903 = vmatmul.msk.bf16.gmra.mxu2 %vm99_vm1, %v1338_v57  ;;  %v3967_v57 = vld [vmem:[#allocation3_spill] sm:$0xff] }
 0x31c   :  { %v1710_v62 = vperm.slane %v1692_v3, 0  ;;  %v1699_v21 = vmul.f32 %v3428_v52, %v3967_v57 }
 0x31e   :  { %1711 = vrot.lane.b32.xlu1 %v1710_v62, %s2243_s25 }
 0x32b   :  { %1904 = vmatmul.msk.bf16.gmra.mxu2 %vm99_vm1, %v1339_v8 }
 0x33b   :  { %1905 = vmatmul.msk.bf16.gmra.mxu2 %vm99_vm1, %v1340_v31 }
 0x34b   :  { %1906 = vmatmul.msk.bf16.gmra.mxu2 %vm99_vm1, %v1341_v22 }
 0x35b   :  { %1907 = vmatmul.msk.bf16.gmra.mxu2 %vm99_vm1, %v1342_v0 }
 0x36b   :  { %1908 = vmatmul.msk.bf16.gmra.mxu2 %vm99_vm1, %v1343_v55 }
 0x38e   :  { %v3575_v6 = vpop.f32.mrf.mxu2 }
 0x38f   :  { %v1461_v23 = vmul.f32 %v3575_v6, %v3575_v6  ;;  %v1423_v19 = vsel %vm949_vm9, %v3575_v6, 0.0 }
 0x390   :  { %v1712_v27 = vpop.permute.xlu1 %1711 }
 0x391   :  { %v1716_v20 = vadd.f32 %v1712_v27, %v1695_v35  ;;  %v1715_v46 = vadd.f32 %v1712_v27, %v1694_v42  ;;  %v1714_v36 = vadd.f32 %v1712_v27, %v1693_v49  ;;  %v1719_v40 = vadd.f32 %v1712_v27, %v1698_v17 }
 0x392   :  { %v1718_v53 = vadd.f32 %v1712_v27, %v1697_v12  ;;  %v1717_v14 = vadd.f32 %v1712_v27, %v1696_v28  ;;  %v1722_v3 = vadd.f32 %v1712_v27, %v1701_v29  ;;  %v1721_v13 = vadd.f32 %v1712_v27, %v1700_v25 }
 0x393   :  { %1750 = vrot.lane.b32.xlu1 %v1716_v20, %s2247_s4  ;;  %1748 = vrot.lane.b32.xlu0 %v1715_v46, %s2247_s4  ;;  %v1720_v1 = vadd.f32 %v1712_v27, %v1699_v21  ;;  %v1725_v39 = vadd.f32 %v1712_v27, %v1704_v24  ;;  %v1724_v10 = vadd.f32 %v1712_v27, %v1703_v37  ;;  %v1477_v58 = vsel %vm949_vm9, %v1461_v23, 0.0 }
 0x394   :  { %1746 = vrot.lane.b32.xlu2 %v1714_v36, %s2247_s4  ;;  %v1723_v2 = vadd.f32 %v1712_v27, %v1702_v47  ;;  %v1728_v22 = vadd.f32 %v1712_v27, %v1707_v32  ;;  %v1727_v34 = vadd.f32 %v1712_v27, %v1706_v59  ;;  %v1726_v45 = vadd.f32 %v1712_v27, %v1705_v30 }
 0x395   :  { %v1729_v44 = vadd.f32 %v1712_v27, %v1708_v54 }
 0x396   :  { %v3586_v61 = vpop.f32.mrf.mxu2 }
 0x397   :  { %v1462_v5 = vmul.f32 %v3586_v61, %v3586_v61  ;;  %v1424_v52 = vsel %vm949_vm9, %v3586_v61, 0.0 }
 0x398   :  { %v1425_v43 = vadd.f32 %v1424_v52, %v1423_v19 }
 0x399   :  { %v1478_v26 = vsel %vm949_vm9, %v1462_v5, 0.0 }
 0x39a   :  { %v1479_v55 = vadd.f32 %v1478_v26, %v1477_v58 }
 0x39b   :  { %1756 = vrot.lane.b32.xlu1 %v1719_v40, %s2247_s4  ;;  %1754 = vrot.lane.b32.xlu0 %v1718_v53, %s2247_s4 }
 0x39c   :  { %1752 = vrot.lane.b32.xlu2 %v1717_v14, %s2247_s4 }
 0x39e   :  { %v3597_v56 = vpop.f32.mrf.mxu2 }
 0x39f   :  { %v1463_v9 = vmul.f32 %v3597_v56, %v3597_v56  ;;  %v1426_v31 = vsel %vm949_vm9, %v3597_v56, 0.0 }
 0x3a0   :  { %v1427_v35 = vadd.f32 %v1426_v31, %v1425_v43 }
 0x3a1   :  { %v1480_v4 = vsel %vm949_vm9, %v1463_v9, 0.0 }
 0x3a2   :  { %v1481_v49 = vadd.f32 %v1480_v4, %v1479_v55 }
 0x3a3   :  { %1762 = vrot.lane.b32.xlu1 %v1722_v3, %s2247_s4  ;;  %1760 = vrot.lane.b32.xlu0 %v1721_v13, %s2247_s4 }
 0x3a4   :  { %1758 = vrot.lane.b32.xlu2 %v1720_v1, %s2247_s4 }
 0x3a6   :  { %v3608_v62 = vpop.f32.mrf.mxu2 }
 0x3a7   :  { %v1464_v38 = vmul.f32 %v3608_v62, %v3608_v62  ;;  %v1428_v60 = vsel %vm949_vm9, %v3608_v62, 0.0 }
 0x3a8   :  { %v1429_v20 = vadd.f32 %v1428_v60, %v1427_v35 }
 0x3a9   :  { %v1482_v42 = vsel %vm949_vm9, %v1464_v38, 0.0 }
 0x3aa   :  { %v1483_v12 = vadd.f32 %v1482_v42, %v1481_v49 }
 0x3ab   :  { %1768 = vrot.lane.b32.xlu1 %v1725_v39, %s2247_s4  ;;  %1766 = vrot.lane.b32.xlu0 %v1724_v10, %s2247_s4  ;;  %v3693_v10 = vpop.f32.mrf.mxu3 }
 0x3ac   :  { %1764 = vrot.lane.b32.xlu2 %v1723_v2, %s2247_s4  ;;  %v1475_v35 = vmul.f32 %v3693_v10, %v3693_v10 }
 0x3ae   :  { %v3619_v7 = vpop.f32.mrf.mxu2 }
 0x3af   :  { %v1465_v11 = vmul.f32 %v3619_v7, %v3619_v7  ;;  %v1430_v27 = vsel %vm949_vm9, %v3619_v7, 0.0 }
 0x3b0   :  { %v1431_v28 = vadd.f32 %v1430_v27, %v1429_v20  ;;  %v1450_v20 = vsel %vm949_vm9, %v3693_v10, 0.0 }
 0x3b1   :  { %v1484_v46 = vsel %vm949_vm9, %v1465_v11, 0.0 }
 0x3b2   :  { %v1485_v25 = vadd.f32 %v1484_v46, %v1483_v12 }
 0x3b3   :  { %1774 = vrot.lane.b32.xlu1 %v1728_v22, %s2247_s4  ;;  %1772 = vrot.lane.b32.xlu0 %v1727_v34, %s2247_s4  ;;  %v3716_v4 = vpop.f32.mrf.mxu3 }
 0x3b4   :  { %1770 = vrot.lane.b32.xlu2 %v1726_v45, %s2247_s4  ;;  %v1476_v46 = vmul.f32 %v3716_v4, %v3716_v4 }
 0x3b6   :  { %v3630_v8 = vpop.f32.mrf.mxu2 }
 0x3b7   :  { %v1466_v33 = vmul.f32 %v3630_v8, %v3630_v8  ;;  %v1432_v36 = vsel %vm949_vm9, %v3630_v8, 0.0 }
 0x3b8   :  { %v1433_v57 = vadd.f32 %v1432_v36, %v1431_v28  ;;  %v1504_v28 = vsel %vm949_vm9, %v1475_v35, 0.0 }
 0x3b9   :  { %v1486_v53 = vsel %vm949_vm9, %v1466_v33, 0.0 }
 0x3ba   :  { %v1487_v1 = vadd.f32 %v1486_v53, %v1485_v25  ;;  %v1452_v53 = vsel %vm949_vm9, %v3716_v4, 0.0  ;;  %v1506_v25 = vsel %vm949_vm9, %v1476_v46, 0.0 }
 0x3bc   :  { %1776 = vrot.lane.b32.xlu2 %v1729_v44, %s2247_s4 }
 0x3be   :  { %v3635_v50 = vpop.f32.mrf.mxu2 }
 0x3bf   :  { %v1467_v17 = vmul.f32 %v3635_v50, %v3635_v50  ;;  %v1434_v14 = vsel %vm949_vm9, %v3635_v50, 0.0 }
 0x3c0   :  { %v1435_v24 = vadd.f32 %v1434_v14, %v1433_v57 }
 0x3c1   :  { %v1488_v21 = vsel %vm949_vm9, %v1467_v17, 0.0 }
 0x3c2   :  { %v1489_v2 = vadd.f32 %v1488_v21, %v1487_v1 }
 0x3c6   :  { %v3637_v41 = vpop.f32.mrf.mxu2 }
 0x3c7   :  { %v1468_v29 = vmul.f32 %v3637_v41, %v3637_v41  ;;  %v1436_v3 = vsel %vm949_vm9, %v3637_v41, 0.0 }
 0x3c8   :  { %v1437_v48 = vadd.f32 %v1436_v3, %v1435_v24 }
 0x3c9   :  { %v1490_v37 = vsel %vm949_vm9, %v1468_v29, 0.0 }
 0x3ca   :  { %v1491_v63 = vadd.f32 %v1490_v37, %v1489_v2 }
 0x3ce   :  { %v3639_v51 = vpop.f32.mrf.mxu2 }
 0x3cf   :  { %v1469_v13 = vmul.f32 %v3639_v51, %v3639_v51  ;;  %v1438_v47 = vsel %vm949_vm9, %v3639_v51, 0.0 }
 0x3d0   :  { %v1439_v30 = vadd.f32 %v1438_v47, %v1437_v48 }
 0x3d1   :  { %v1492_v32 = vsel %vm949_vm9, %v1469_v13, 0.0 }
 0x3d2   :  { %v1493_v54 = vadd.f32 %v1492_v32, %v1491_v63 }
 0x3d6   :  { %v3641_v16 = vpop.f32.mrf.mxu2 }
 0x3d7   :  { %v1470_v39 = vmul.f32 %v3641_v16, %v3641_v16  ;;  %v1440_v18 = vsel %vm949_vm9, %v3641_v16, 0.0 }
 0x3d8   :  { %v1441_v44 = vadd.f32 %v1440_v18, %v1439_v30 }
 0x3d9   :  { %v1494_v34 = vsel %vm949_vm9, %v1470_v39, 0.0 }
 0x3da   :  { %v1495_v9 = vadd.f32 %v1494_v34, %v1493_v54 }
 0x3de   :  { %v3651_v0 = vpop.f32.mrf.mxu2 }
 0x3df   :  { %v1471_v59 = vmul.f32 %v3651_v0, %v3651_v0  ;;  %v1442_v45 = vsel %vm949_vm9, %v3651_v0, 0.0 }
 0x3e0   :  { %v1443_v19 = vadd.f32 %v1442_v45, %v1441_v44 }
 0x3e1   :  { %v1496_v5 = vsel %vm949_vm9, %v1471_v59, 0.0 }
 0x3e2   :  { %v1497_v38 = vadd.f32 %v1496_v5, %v1495_v9 }
 0x3e6   :  { %v3676_v40 = vpop.f32.mrf.mxu2 }
 0x3e7   :  { %v1472_v15 = vmul.f32 %v3676_v40, %v3676_v40  ;;  %v1444_v23 = vsel %vm949_vm9, %v3676_v40, 0.0 }
 0x3e8   :  { %v1445_v43 = vadd.f32 %v1444_v23, %v1443_v19 }
 0x3e9   :  { %v1498_v26 = vsel %vm949_vm9, %v1472_v15, 0.0 }
 0x3ea   :  { %v1499_v60 = vadd.f32 %v1498_v26, %v1497_v38 }
 0x3ee   :  { %v3700_v22 = vpop.f32.mrf.mxu2  ;;  %v3735_v39 = vpop.permute.xlu2 %1746 }
 0x3ef   :  { %v1473_v52 = vmul.f32 %v3700_v22, %v3700_v22  ;;  %v1446_v31 = vsel %vm949_vm9, %v3700_v22, 0.0 }
 0x3f0   :  { %v1447_v11 = vadd.f32 %v1446_v31, %v1445_v43 }
 0x3f1   :  { %v1500_v58 = vsel %vm949_vm9, %v1473_v52, 0.0 }
 0x3f2   :  { %v1501_v33 = vadd.f32 %v1500_v58, %v1499_v60  ;;  %v1421_v58 = vld [vmem:[%s3879_s8] sm:$0x1] }
 0x3f6   :  { %v3718_v55 = vpop.f32.mrf.mxu2  ;;  %v1753_v15 = vpop.permute.xlu2 %1752 }
 0x3f7   :  { %v1448_v42 = vsel %vm949_vm9, %v3718_v55, 0.0  ;;  %v1474_v27 = vmul.f32 %v3718_v55, %v3718_v55 }
 0x3f8   :  { %v1449_v49 = vadd.f32 %v1448_v42, %v1447_v11 }
 0x3f9   :  { %v1502_v36 = vsel %vm949_vm9, %v1474_v27, 0.0  ;;  %v1422_v27 = vld [vmem:[%s3880_s9] sm:$0x1] }
 0x3fa   :  { %v1451_v17 = vadd.f32 %v1450_v20, %v1449_v49  ;;  %v1503_v12 = vadd.f32 %v1502_v36, %v1501_v33 }
 0x3fc   :  { %v1453_v14 = vadd.f32 %v1452_v53, %v1451_v17  ;;  %v1505_v29 = vadd.f32 %v1504_v28, %v1503_v12 }
 0x3fe   :  { %v1454_v57 = vrot.slane %v1453_v14, 4  ;;  %v1507_v21 = vadd.f32 %v1506_v25, %v1505_v29  ;;  %v1759_v9 = vpop.permute.xlu2 %1758 }
 0x400   :  { %v1455_v3 = vadd.f32 %v1454_v57, %v1453_v14  ;;  %v1508_v13 = vrot.slane %v1507_v21, 4 }
 0x402   :  { %v1456_v1 = vrot.slane %v1455_v3, 2  ;;  %v1509_v24 = vadd.f32 %v1508_v13, %v1507_v21 }
 0x404   :  { %v1457_v37 = vadd.f32 %v1456_v1, %v1455_v3  ;;  %v1510_v47 = vrot.slane %v1509_v24, 2 }
 0x405   :  { %v1751_v44 = vpop.permute.xlu1 %1750  ;;  %v3737_v5 = vpop.permute.xlu0 %1748 }
 0x406   :  { %v1458_v2 = vrot.slane %v1457_v37, 1  ;;  %v1511_v48 = vadd.f32 %v1510_v47, %v1509_v24  ;;  %v1765_v35 = vpop.permute.xlu2 %1764 }
 0x408   :  { %v1459_v32 = vadd.f32 %v1458_v2, %v1457_v37  ;;  %v1512_v18 = vrot.slane %v1511_v48, 1 }
 0x40a   :  { %v1460_v59 = vmul.f32 0.0078125, %v1459_v32  ;;  %v1513_v63 = vadd.f32 %v1512_v18, %v1511_v48 }
 0x40c   :  { %v1514_v30 = vmul.f32 0.0078125, %v1513_v63  ;;  %v1515_v34 = vmul.f32 %v1460_v59, %v1460_v59 }
 0x40d   :  { %v1757_v31 = vpop.permute.xlu1 %1756  ;;  %v1755_v43 = vpop.permute.xlu0 %1754 }
 0x40e   :  { %v1516_v45 = vsub.f32 %v1514_v30, %v1515_v34 }
 0x410   :  { %v1517_v54 = vadd.f32 1e-05, %v1516_v45 }
 0x412   :  { %2236 = vrsqrt.f32 %v1517_v54  ;;  %vm1524_vm1 = vweird.f32 %v1517_v54 }
 0x415   :  { %v3747_v20 = vpop.permute.xlu1 %1762  ;;  %v3749_v46 = vpop.permute.xlu0 %1760 }
 0x418   :  { %v2237_v23 = vpop.eup %2236 }
 0x419   :  { %v1519_v52 = vmul.f32 %v2237_v23, %v1517_v54  ;;  %vm1525_vm0 = vweird.f32 %v2237_v23 }
 0x41a   :  { %vm1526_vm10 = vmor %vm1524_vm1, %vm1525_vm0 }
 0x41b   :  { %v1520_v19 = vmul.f32 %v2237_v23, %v1519_v52 }
 0x41d   :  { %v1521_v26 = vmul.f32 0.5, %v1520_v19  ;;  %v1769_v34 = vpop.permute.xlu1 %1768  ;;  %v1767_v45 = vpop.permute.xlu0 %1766 }
 0x41f   :  { %v1522_v38 = vsub.f32 1.5, %v1521_v26 }
 0x421   :  { %v1523_v60 = vmul.f32 %v2237_v23, %v1522_v38 }
 0x423   :  { %v1527_v11 = vsel %vm1526_vm10, %v2237_v23, %v1523_v60 }
 0x424   :  { %v1528_v42 = vmul.f32 %v1527_v11, %v1421_v58 }
 0x426   :  { %v1529_v33 = vmul.f32 %v1528_v42, %v1460_v59  ;;  %v3745_v49 = vperm.slane %v1528_v42, 0 }
 0x428   :  { %v1530_v36 = vsub.f32 %v1422_v27, %v1529_v33  ;;  %v1547_v17 = vmul.f32 %v3745_v49, %v3718_v55  ;;  %v1534_v12 = vmul.f32 %v3745_v49, %v3575_v6  ;;  %v1537_v28 = vmul.f32 %v3745_v49, %v3608_v62 }
 0x429   :  { %v1540_v53 = vmul.f32 %v3745_v49, %v3635_v50  ;;  %v1536_v14 = vmul.f32 %v3745_v49, %v3597_v56  ;;  %v1535_v29 = vmul.f32 %v3745_v49, %v3586_v61  ;;  %v1543_v25 = vmul.f32 %v3745_v49, %v3641_v16 }
 0x42a   :  { %v3765_v57 = vperm.slane %v1530_v36, 0  ;;  %v1539_v6 = vmul.f32 %v3745_v49, %v3630_v8  ;;  %v1538_v62 = vmul.f32 %v3745_v49, %v3619_v7  ;;  %v1546_v50 = vmul.f32 %v3745_v49, %v3700_v22 }
 0x42b   :  { %v1542_v56 = vmul.f32 %v3745_v49, %v3639_v51  ;;  %v1541_v61 = vmul.f32 %v3745_v49, %v3637_v41  ;;  %v1549_v16 = vmul.f32 %v3745_v49, %v3716_v4  ;;  %v1545_v55 = vmul.f32 %v3745_v49, %v3676_v40  ;;  %v1771_v4 = vpop.permute.xlu2 %1770 }
 0x42c   :  { %v1553_v8 = vadd.f32 %v3765_v57, %v1534_v12  ;;  %v1556_v21 = vadd.f32 %v3765_v57, %v1537_v28  ;;  %v1559_v7 = vadd.f32 %v3765_v57, %v1540_v53  ;;  %v1555_v22 = vadd.f32 %v3765_v57, %v1536_v14 }
 0x42d   :  { %v1554_v3 = vadd.f32 %v3765_v57, %v1535_v29  ;;  %v1562_v51 = vadd.f32 %v3765_v57, %v1543_v25  ;;  %v1558_v41 = vadd.f32 %v3765_v57, %v1539_v6  ;;  %v1557_v13 = vadd.f32 %v3765_v57, %v1538_v62 }
 0x42e   :  { %v1569_v1 = vmax.f32 %v1553_v8, 0.0  ;;  %v1572_v24 = vmax.f32 %v1556_v21, 0.0  ;;  %v1575_v40 = vmax.f32 %v1559_v7, 0.0  ;;  %v1571_v37 = vmax.f32 %v1555_v22, 0.0  ;;  %v1773_v8 = vpop.permute.xlu0 %1772 }
 0x42f   :  { %v1570_v47 = vmax.f32 %v1554_v3, 0.0  ;;  %v1578_v2 = vmax.f32 %v1562_v51, 0.0  ;;  %v1574_v48 = vmax.f32 %v1558_v41, 0.0  ;;  %v1573_v32 = vmax.f32 %v1557_v13, 0.0 }
 0x430   :  { %v1794_v18 = vadd.f32 %v3735_v39, %v1569_v1  ;;  %v1797_v59 = vadd.f32 %v1753_v15, %v1572_v24  ;;  %v1800_v63 = vadd.f32 %v1759_v9, %v1575_v40  ;;  %v1796_v30 = vadd.f32 %v1751_v44, %v1571_v37 }
 0x431   :  { %v1795_v54 = vadd.f32 %v3737_v5, %v1570_v47  ;;  %v1803_v23 = vadd.f32 %v1765_v35, %v1578_v2  ;;  %v1799_v52 = vadd.f32 %v1757_v31, %v1574_v48  ;;  %v1798_v19 = vadd.f32 %v1755_v43, %v1573_v32 }
 0x432   :  { %v1810_v26 = vmax.f32 %v1794_v18, 0.0  ;;  %v1813_v38 = vmax.f32 %v1797_v59, 0.0  ;;  %v1816_v58 = vmax.f32 %v1800_v63, 0.0  ;;  %v1812_v60 = vmax.f32 %v1796_v30, 0.0 }
 0x433   :  { %v1811_v11 = vmax.f32 %v1795_v54, 0.0  ;;  %v1819_v42 = vmax.f32 %v1803_v23, 0.0  ;;  %v1815_v27 = vmax.f32 %v1799_v52, 0.0  ;;  %v1814_v33 = vmax.f32 %v1798_v19, 0.0 }
 0x434   :  { %1826 = vst.msk [vmem:[%s3881_s12] sm:$0xff] %vm949_vm9, %v1810_v26  ;;  %v1565_v39 = vadd.f32 %v3765_v57, %v1546_v50  ;;  %v1561_v15 = vadd.f32 %v3765_v57, %v1542_v56  ;;  %v1560_v44 = vadd.f32 %v3765_v57, %v1541_v61  ;;  %v1568_v5 = vadd.f32 %v3765_v57, %v1549_v16 }
 0x435   :  { %1829 = vst.msk [vmem:[%s3881_s12 + $0x18] sm:$0xff] %vm949_vm9, %v1813_v38  ;;  %v1564_v9 = vadd.f32 %v3765_v57, %v1545_v55  ;;  %v1544_v31 = vmul.f32 %v3745_v49, %v3651_v0  ;;  %v1548_v43 = vmul.f32 %v3745_v49, %v3693_v10  ;;  %v1566_v35 = vadd.f32 %v3765_v57, %v1547_v17  ;;  %v1777_v0 = vpop.permute.xlu2 %1776 }
 0x436   :  { %1832 = vst.msk [vmem:[%s3881_s12 + $0x30] sm:$0xff] %vm949_vm9, %v1816_v58  ;;  %v1581_v36 = vmax.f32 %v1565_v39, 0.0  ;;  %v1577_v12 = vmax.f32 %v1561_v15, 0.0  ;;  %v1576_v28 = vmax.f32 %v1560_v44, 0.0  ;;  %v1584_v53 = vmax.f32 %v1568_v5, 0.0 }
 0x437   :  { %1828 = vst.msk [vmem:[%s3881_s12 + $0x10] sm:$0xff] %vm949_vm9, %v1812_v60  ;;  %v1580_v14 = vmax.f32 %v1564_v9, 0.0  ;;  %v1563_v10 = vadd.f32 %v3765_v57, %v1544_v31  ;;  %v1567_v49 = vadd.f32 %v3765_v57, %v1548_v43  ;;  %v1582_v17 = vmax.f32 %v1566_v35, 0.0 }
 0x438   :  { %1827 = vst.msk [vmem:[%s3881_s12 + $0x8] sm:$0xff] %vm949_vm9, %v1811_v11  ;;  %v1806_v29 = vadd.f32 %v1771_v4, %v1581_v36  ;;  %v1802_v25 = vadd.f32 %v3747_v20, %v1577_v12  ;;  %v1801_v6 = vadd.f32 %v3749_v46, %v1576_v28  ;;  %v1809_v62 = vadd.f32 %v1777_v0, %v1584_v53  ;;  %v1775_v20 = vpop.permute.xlu1 %1774 }
 0x439   :  { %1835 = vst.msk [vmem:[%s3881_s12 + $0x48] sm:$0xff] %vm949_vm9, %v1819_v42  ;;  %v1805_v50 = vadd.f32 %v1769_v34, %v1580_v14  ;;  %v1579_v56 = vmax.f32 %v1563_v10, 0.0  ;;  %v1583_v57 = vmax.f32 %v1567_v49, 0.0  ;;  %v1807_v22 = vadd.f32 %v1773_v8, %v1582_v17 }
 0x43a   :  { %1831 = vst.msk [vmem:[%s3881_s12 + $0x28] sm:$0xff] %vm949_vm9, %v1815_v27  ;;  %v1822_v61 = vmax.f32 %v1806_v29, 0.0  ;;  %v1818_v16 = vmax.f32 %v1802_v25, 0.0  ;;  %v1817_v55 = vmax.f32 %v1801_v6, 0.0  ;;  %v1825_v46 = vmax.f32 %v1809_v62, 0.0 }
 0x43b   :  { %1830 = vst.msk [vmem:[%s3881_s12 + $0x20] sm:$0xff] %vm949_vm9, %v1814_v33  ;;  %v1804_v21 = vadd.f32 %v1767_v45, %v1579_v56  ;;  %v1808_v7 = vadd.f32 %v1775_v20, %v1583_v57  ;;  %v1821_v3 = vmax.f32 %v1805_v50, 0.0  ;;  %v1823_v13 = vmax.f32 %v1807_v22, 0.0 }
 0x43c   :  { %1838 = vst.msk [vmem:[%s3881_s12 + $0x60] sm:$0xff] %vm949_vm9, %v1822_v61 }
 0x43d   :  { %1834 = vst.msk [vmem:[%s3881_s12 + $0x40] sm:$0xff] %vm949_vm9, %v1818_v16  ;;  %v1820_v51 = vmax.f32 %v1804_v21, 0.0  ;;  %v1824_v41 = vmax.f32 %v1808_v7, 0.0 }
 0x43e   :  { %1833 = vst.msk [vmem:[%s3881_s12 + $0x38] sm:$0xff] %vm949_vm9, %v1817_v55 }
 0x43f   :  { %1841 = vst.msk [vmem:[%s3881_s12 + $0x78] sm:$0xff] %vm949_vm9, %v1825_v46 }
 0x440   :  { %1837 = vst.msk [vmem:[%s3881_s12 + $0x58] sm:$0xff] %vm949_vm9, %v1821_v3 }
 0x441   :  { %1836 = vst.msk [vmem:[%s3881_s12 + $0x50] sm:$0xff] %vm949_vm9, %v1820_v51 }
 0x442   :  { %1840 = vst.msk [vmem:[%s3881_s12 + $0x70] sm:$0xff] %vm949_vm9, %v1824_v41 }
 0x443   :  { %1839 = vst.msk [vmem:[%s3881_s12 + $0x68] sm:$0xff] %vm949_vm9, %v1823_v13 }

</bundles_post_ra>
